<compile_context>
chip_gen: v7x
topology: tpu7x:2x2x1
jax: 0.10.0
libtpu: 0.0.40
codegen_flags: <defaults>
</compile_context>

<pallas_src>
import jax
import jax.numpy as jnp
from jax import lax
from jax.experimental import pallas as pl
from jax.experimental.pallas import tpu as pltpu

# --- model dims (from the PyTorch script: emb_dim=10, hid_dim=8, output_dim=6) ---
SRC_VOCAB = 7
TRG_VOCAB = 6          # decoder output_dim
EMB_DIM = 10
HID_DIM = 8
N_LAYERS = 1
SRC_LEN = 6
TRG_LEN = 5
BATCH = 2


# ------------------------------ fused kernel --------------------------------
def seq2seq_kernel(tf_ref, src_ref, trg_ref,
                   enc_emb_ref, enc_wih_ref, enc_whh_ref, enc_b_ref,
                   dec_emb_ref, dec_wih_ref, dec_whh_ref, dec_b_ref,
                   fcw_ref, fcb_ref,
                   out_ref):
    T, B, V = out_ref.shape
    H = enc_whh_ref.shape[0]
    SB = src_ref.shape[0]                 # S * B (src ids flattened time-major)
    Vs = enc_emb_ref.shape[0]
    S = SB // B

    def gate_update(gates, c):
        """PyTorch LSTMCell semantics; gate order i, f, g, o.
        Two full-tile EUP passes (sigmoid + tanh over (B, 4H)) then slice."""
        s = jax.nn.sigmoid(gates)
        tg = jnp.tanh(gates)
        i = s[:, 0 * H:1 * H]
        f = s[:, 1 * H:2 * H]
        g = tg[:, 2 * H:3 * H]
        o = s[:, 3 * H:4 * H]
        c_new = f * c + i * g
        h_new = o * jnp.tanh(c_new)
        return h_new, c_new

    # ------------------------------ encoder ------------------------------
    # One-hot built in-kernel from SMEM ids via iota compares (VPU, one vreg tile).
    row_s = lax.broadcasted_iota(jnp.int32, (SB, Vs), 0)
    lane_s = lax.broadcasted_iota(jnp.int32, (SB, Vs), 1)
    src_oh = jnp.zeros((SB, Vs), jnp.float32)
    for k in range(SB):                   # SB = 12, fully unrolled, off the h/c chain
        src_oh = jnp.where((row_s == k) & (lane_s == src_ref[k]), 1.0, src_oh)

    # Non-recurrent input projection hoisted out of the recurrence:
    # (one_hot @ emb) @ W_ih for all S steps, plus the folded bias.
    x_proj = (jnp.dot(jnp.dot(src_oh, enc_emb_ref[...],
                              preferred_element_type=jnp.float32),
                      enc_wih_ref[...], preferred_element_type=jnp.float32)
              + enc_b_ref[...])                                   # (S*B, 4H)
    enc_whh = enc_whh_ref[...]

    h = jnp.zeros((B, H), jnp.float32)
    c = jnp.zeros((B, H), jnp.float32)
    for t in range(S):                    # tiny static trip count: fully unrolled
        # NOTE: on v5e a VPU FMA chain (H==8 sublanes) may undercut this tiny MXU
        # push; kept on MXU here (better on v6e/v7x per review).
        gates = (x_proj[t * B:(t + 1) * B, :]
                 + jnp.dot(h, enc_whh, preferred_element_type=jnp.float32))
        h, c = gate_update(gates, c)

    # ------------------------------ decoder ------------------------------
    # Embedding projection hoisted once as a vreg value; no VMEM scratch.
    dec_proj = jnp.dot(dec_emb_ref[...], dec_wih_ref[...],
                       preferred_element_type=jnp.float32)        # (V, 4H)
    dec_whh = dec_whh_ref[...]
    dec_b = dec_b_ref[...]
    fcw = fcw_ref[...]
    fcb = fcb_ref[...]

    row_idx = lax.broadcasted_iota(jnp.int32, (B, V), 0)
    lane_idx = lax.broadcasted_iota(jnp.int32, (B, V), 1)

    def trg_onehot(t):
        oh = jnp.zeros((B, V), jnp.float32)
        for b in range(B):
            oh = jnp.where((row_idx == b) & (lane_idx == trg_ref[t * B + b]),
                           1.0, oh)
        return oh

    trg_ohs = [trg_onehot(t) for t in range(T)]   # hoisted above the recurrence

    # outputs = torch.zeros(trg_len, batch, trg_vocab); only row 0 stays zero.
    out_ref[0] = jnp.zeros((B, V), jnp.float32)

    # TODO(synk): nn.Dropout(0.5) on the decoder embedding is stochastic in train
    # mode; treated as identity (eval-mode semantics) here.
    inp_oh = trg_ohs[0]                            # one-hot of trg[0]
    for t in range(1, T):                 # tiny static trip count: fully unrolled
        gates = (jnp.dot(h, dec_whh, preferred_element_type=jnp.float32)
                 + jnp.dot(inp_oh, dec_proj, preferred_element_type=jnp.float32)
                 + dec_b)
        h, c = gate_update(gates, c)
        logits = jnp.dot(h, fcw, preferred_element_type=jnp.float32) + fcb
        # LogSoftmax(dim=1)
        m = jnp.max(logits, axis=1, keepdims=True)
        lse = jnp.log(jnp.sum(jnp.exp(logits - m), axis=1, keepdims=True))
        out_ref[t] = logits - m - lse
        # argmax(log_softmax(logits)) == argmax(logits): reuse m, first-occurrence ties.
        top1 = jnp.min(jnp.where(logits == m, lane_idx, V), axis=1, keepdims=True)
        top1_oh = (lane_idx == top1).astype(jnp.float32)
        inp_oh = jnp.where(tf_ref[t] > 0, trg_ohs[t], top1_oh)


# --------------------------------- wrapper ----------------------------------
@jax.jit
def seq2seq_forward(src, trg, params, tf_flags):
    S, B = src.shape
    T = trg.shape[0]
    V = TRG_VOCAB

    vmem = pl.BlockSpec(memory_space=pltpu.MemorySpace.VMEM)
    smem = pl.BlockSpec(memory_space=pltpu.MemorySpace.SMEM)

    # Raw int32 ids go straight to SMEM (flattened 1-D to keep SMEM padding tiny);
    # one-hots / embeddings are formed inside the kernel.
    src_flat = src.reshape(S * B).astype(jnp.int32)
    trg_flat = trg.reshape(T * B).astype(jnp.int32)

    return pl.pallas_call(
        seq2seq_kernel,
        out_shape=jax.ShapeDtypeStruct((T, B, V), jnp.float32),
        in_specs=[smem, smem, smem] + [vmem] * 10,
        out_specs=vmem,
    )(tf_flags.astype(jnp.int32), src_flat, trg_flat,
      params["enc_emb"], params["enc_wih"], params["enc_whh"], params["enc_b"],
      params["dec_emb"], params["dec_wih"], params["dec_whh"], params["dec_b"],
      params["dec_fcw"], params["dec_fcb"])


# --------------------------- deterministic params ---------------------------
def init_params(key):
    ks = jax.random.split(key, 10)
    n = lambda k, shape: 0.1 * jax.random.normal(k, shape, jnp.float32)
    H, E = HID_DIM, EMB_DIM
    return {
        "enc_emb": n(ks[0], (SRC_VOCAB, E)),
        "enc_wih": n(ks[1], (E, 4 * H)),          # W_ih^T
        "enc_whh": n(ks[2], (H, 4 * H)),          # W_hh^T
        "enc_b":   n(ks[3], (1, 4 * H)),          # b_ih + b_hh (folded)
        "dec_emb": n(ks[4], (TRG_VOCAB, E)),
        "dec_wih": n(ks[5], (E, 4 * H)),
        "dec_whh": n(ks[6], (H, 4 * H)),
        "dec_b":   n(ks[7], (1, 4 * H)),
        "dec_fcw": n(ks[8], (H, TRG_VOCAB)),      # fc_out.weight^T
        "dec_fcb": n(ks[9], (1, TRG_VOCAB)),      # fc_out.bias
    }


# ------------------------------ pure-JAX reference --------------------------
def _lstm_step_ref(x, h, c, wih, whh, b):
    H = h.shape[1]
    gates = x @ wih + h @ whh + b
    i = jax.nn.sigmoid(gates[:, 0 * H:1 * H])
    f = jax.nn.sigmoid(gates[:, 1 * H:2 * H])
    g = jnp.tanh(gates[:, 2 * H:3 * H])
    o = jax.nn.sigmoid(gates[:, 3 * H:4 * H])
    c_new = f * c + i * g
    h_new = o * jnp.tanh(c_new)
    return h_new, c_new


def reference_forward(src, trg, params, tf_flags):
    S, B = src.shape
    T = trg.shape[0]
    V, H = TRG_VOCAB, HID_DIM
    h = jnp.zeros((B, H), jnp.float32)
    c = jnp.zeros((B, H), jnp.float32)
    for t in range(S):
        x = params["enc_emb"][src[t]]
        h, c = _lstm_step_ref(x, h, c, params["enc_wih"], params["enc_whh"], params["enc_b"])
    outs = [jnp.zeros((B, V), jnp.float32)]
    inp = trg[0]
    for t in range(1, T):
        x = params["dec_emb"][inp]
        h, c = _lstm_step_ref(x, h, c, params["dec_wih"], params["dec_whh"], params["dec_b"])
        logits = h @ params["dec_fcw"] + params["dec_fcb"]
        pred = jax.nn.log_softmax(logits, axis=1)
        outs.append(pred)
        top1 = jnp.argmax(pred, axis=1).astype(jnp.int32)
        inp = jnp.where(tf_flags[t] > 0, trg[t], top1)
    return jnp.stack(outs)


if __name__ == "__main__":
    key = jax.random.PRNGKey(0)
    kp, ksrc, ktrg, ktf = jax.random.split(key, 4)
    params = init_params(kp)
    src = jax.random.randint(ksrc, (SRC_LEN, BATCH), 0, SRC_VOCAB, dtype=jnp.int32)
    trg = jax.random.randint(ktrg, (TRG_LEN, BATCH), 0, TRG_VOCAB, dtype=jnp.int32)
    # deterministic teacher-forcing coin flips (random.random() < ratio in torch)
    tf_flags = jax.random.bernoulli(ktf, 0.5, (TRG_LEN,)).astype(jnp.int32)

    out = seq2seq_forward(src, trg, params, tf_flags)
    out = jax.block_until_ready(out)

    ref = reference_forward(src, trg, params, tf_flags)
    assert out.shape == (TRG_LEN, BATCH, TRG_VOCAB)
    assert jnp.allclose(out, ref, atol=1e-5, rtol=1e-5), "mismatch vs JAX reference"
    print("KERNEL_OK")
</pallas_src>

<mosaic_0001>
module attributes {stable_mosaic.version = 11 : i64} {
  func.func @seq2seq_kernel(%arg0: memref<5xi32, #tpu.memory_space<smem>>, %arg1: memref<12xi32, #tpu.memory_space<smem>>, %arg2: memref<10xi32, #tpu.memory_space<smem>>, %arg3: memref<7x10xf32, #tpu.memory_space<vmem>>, %arg4: memref<10x32xf32, #tpu.memory_space<vmem>>, %arg5: memref<8x32xf32, #tpu.memory_space<vmem>>, %arg6: memref<1x32xf32, #tpu.memory_space<vmem>>, %arg7: memref<6x10xf32, #tpu.memory_space<vmem>>, %arg8: memref<10x32xf32, #tpu.memory_space<vmem>>, %arg9: memref<8x32xf32, #tpu.memory_space<vmem>>, %arg10: memref<1x32xf32, #tpu.memory_space<vmem>>, %arg11: memref<8x6xf32, #tpu.memory_space<vmem>>, %arg12: memref<1x6xf32, #tpu.memory_space<vmem>>, %arg13: memref<5x2x6xf32, #tpu.memory_space<vmem>>) attributes {dimension_semantics = [], scalar_prefetch = 0 : i64, scratch_operands = 0 : i64, tpu.core_type = #tpu.core_type<tc>} {
    %0 = tpu.iota {dimensions = array<i32: 0>} : vector<12x7xi32>
    %1 = tpu.iota {dimensions = array<i32: 1>} : vector<12x7xi32>
    %cst = arith.constant 0.000000e+00 : f32
    %2 = vector.broadcast %cst : f32 to vector<12x7xf32>
    %c0_i32 = arith.constant 0 : i32
    %3 = vector.broadcast %c0_i32 : i32 to vector<12x7xi32>
    %4 = arith.cmpi eq, %0, %3 : vector<12x7xi32>
    %c0 = arith.constant 0 : index
    %5 = memref.load %arg1[%c0] : memref<12xi32, #tpu.memory_space<smem>>
    %6 = vector.broadcast %5 : i32 to vector<12x7xi32>
    %7 = arith.cmpi eq, %1, %6 : vector<12x7xi32>
    %8 = arith.andi %4, %7 : vector<12x7xi1>
    %cst_0 = arith.constant 1.000000e+00 : f32
    %9 = vector.broadcast %cst_0 : f32 to vector<12x7xf32>
    %10 = arith.select %8, %9, %2 : vector<12x7xi1>, vector<12x7xf32>
    %c1_i32 = arith.constant 1 : i32
    %11 = vector.broadcast %c1_i32 : i32 to vector<12x7xi32>
    %12 = arith.cmpi eq, %0, %11 : vector<12x7xi32>
    %c1 = arith.constant 1 : index
    %13 = memref.load %arg1[%c1] : memref<12xi32, #tpu.memory_space<smem>>
    %14 = vector.broadcast %13 : i32 to vector<12x7xi32>
    %15 = arith.cmpi eq, %1, %14 : vector<12x7xi32>
    %16 = arith.andi %12, %15 : vector<12x7xi1>
    %cst_1 = arith.constant 1.000000e+00 : f32
    %17 = vector.broadcast %cst_1 : f32 to vector<12x7xf32>
    %18 = arith.select %16, %17, %10 : vector<12x7xi1>, vector<12x7xf32>
    %c2_i32 = arith.constant 2 : i32
    %19 = vector.broadcast %c2_i32 : i32 to vector<12x7xi32>
    %20 = arith.cmpi eq, %0, %19 : vector<12x7xi32>
    %c2 = arith.constant 2 : index
    %21 = memref.load %arg1[%c2] : memref<12xi32, #tpu.memory_space<smem>>
    %22 = vector.broadcast %21 : i32 to vector<12x7xi32>
    %23 = arith.cmpi eq, %1, %22 : vector<12x7xi32>
    %24 = arith.andi %20, %23 : vector<12x7xi1>
    %cst_2 = arith.constant 1.000000e+00 : f32
    %25 = vector.broadcast %cst_2 : f32 to vector<12x7xf32>
    %26 = arith.select %24, %25, %18 : vector<12x7xi1>, vector<12x7xf32>
    %c3_i32 = arith.constant 3 : i32
    %27 = vector.broadcast %c3_i32 : i32 to vector<12x7xi32>
    %28 = arith.cmpi eq, %0, %27 : vector<12x7xi32>
    %c3 = arith.constant 3 : index
    %29 = memref.load %arg1[%c3] : memref<12xi32, #tpu.memory_space<smem>>
    %30 = vector.broadcast %29 : i32 to vector<12x7xi32>
    %31 = arith.cmpi eq, %1, %30 : vector<12x7xi32>
    %32 = arith.andi %28, %31 : vector<12x7xi1>
    %cst_3 = arith.constant 1.000000e+00 : f32
    %33 = vector.broadcast %cst_3 : f32 to vector<12x7xf32>
    %34 = arith.select %32, %33, %26 : vector<12x7xi1>, vector<12x7xf32>
    %c4_i32 = arith.constant 4 : i32
    %35 = vector.broadcast %c4_i32 : i32 to vector<12x7xi32>
    %36 = arith.cmpi eq, %0, %35 : vector<12x7xi32>
    %c4 = arith.constant 4 : index
    %37 = memref.load %arg1[%c4] : memref<12xi32, #tpu.memory_space<smem>>
    %38 = vector.broadcast %37 : i32 to vector<12x7xi32>
    %39 = arith.cmpi eq, %1, %38 : vector<12x7xi32>
    %40 = arith.andi %36, %39 : vector<12x7xi1>
    %cst_4 = arith.constant 1.000000e+00 : f32
    %41 = vector.broadcast %cst_4 : f32 to vector<12x7xf32>
    %42 = arith.select %40, %41, %34 : vector<12x7xi1>, vector<12x7xf32>
    %c5_i32 = arith.constant 5 : i32
    %43 = vector.broadcast %c5_i32 : i32 to vector<12x7xi32>
    %44 = arith.cmpi eq, %0, %43 : vector<12x7xi32>
    %c5 = arith.constant 5 : index
    %45 = memref.load %arg1[%c5] : memref<12xi32, #tpu.memory_space<smem>>
    %46 = vector.broadcast %45 : i32 to vector<12x7xi32>
    %47 = arith.cmpi eq, %1, %46 : vector<12x7xi32>
    %48 = arith.andi %44, %47 : vector<12x7xi1>
    %cst_5 = arith.constant 1.000000e+00 : f32
    %49 = vector.broadcast %cst_5 : f32 to vector<12x7xf32>
    %50 = arith.select %48, %49, %42 : vector<12x7xi1>, vector<12x7xf32>
    %c6_i32 = arith.constant 6 : i32
    %51 = vector.broadcast %c6_i32 : i32 to vector<12x7xi32>
    %52 = arith.cmpi eq, %0, %51 : vector<12x7xi32>
    %c6 = arith.constant 6 : index
    %53 = memref.load %arg1[%c6] : memref<12xi32, #tpu.memory_space<smem>>
    %54 = vector.broadcast %53 : i32 to vector<12x7xi32>
    %55 = arith.cmpi eq, %1, %54 : vector<12x7xi32>
    %56 = arith.andi %52, %55 : vector<12x7xi1>
    %cst_6 = arith.constant 1.000000e+00 : f32
    %57 = vector.broadcast %cst_6 : f32 to vector<12x7xf32>
    %58 = arith.select %56, %57, %50 : vector<12x7xi1>, vector<12x7xf32>
    %c7_i32 = arith.constant 7 : i32
    %59 = vector.broadcast %c7_i32 : i32 to vector<12x7xi32>
    %60 = arith.cmpi eq, %0, %59 : vector<12x7xi32>
    %c7 = arith.constant 7 : index
    %61 = memref.load %arg1[%c7] : memref<12xi32, #tpu.memory_space<smem>>
    %62 = vector.broadcast %61 : i32 to vector<12x7xi32>
    %63 = arith.cmpi eq, %1, %62 : vector<12x7xi32>
    %64 = arith.andi %60, %63 : vector<12x7xi1>
    %cst_7 = arith.constant 1.000000e+00 : f32
    %65 = vector.broadcast %cst_7 : f32 to vector<12x7xf32>
    %66 = arith.select %64, %65, %58 : vector<12x7xi1>, vector<12x7xf32>
    %c8_i32 = arith.constant 8 : i32
    %67 = vector.broadcast %c8_i32 : i32 to vector<12x7xi32>
    %68 = arith.cmpi eq, %0, %67 : vector<12x7xi32>
    %c8 = arith.constant 8 : index
    %69 = memref.load %arg1[%c8] : memref<12xi32, #tpu.memory_space<smem>>
    %70 = vector.broadcast %69 : i32 to vector<12x7xi32>
    %71 = arith.cmpi eq, %1, %70 : vector<12x7xi32>
    %72 = arith.andi %68, %71 : vector<12x7xi1>
    %cst_8 = arith.constant 1.000000e+00 : f32
    %73 = vector.broadcast %cst_8 : f32 to vector<12x7xf32>
    %74 = arith.select %72, %73, %66 : vector<12x7xi1>, vector<12x7xf32>
    %c9_i32 = arith.constant 9 : i32
    %75 = vector.broadcast %c9_i32 : i32 to vector<12x7xi32>
    %76 = arith.cmpi eq, %0, %75 : vector<12x7xi32>
    %c9 = arith.constant 9 : index
    %77 = memref.load %arg1[%c9] : memref<12xi32, #tpu.memory_space<smem>>
    %78 = vector.broadcast %77 : i32 to vector<12x7xi32>
    %79 = arith.cmpi eq, %1, %78 : vector<12x7xi32>
    %80 = arith.andi %76, %79 : vector<12x7xi1>
    %cst_9 = arith.constant 1.000000e+00 : f32
    %81 = vector.broadcast %cst_9 : f32 to vector<12x7xf32>
    %82 = arith.select %80, %81, %74 : vector<12x7xi1>, vector<12x7xf32>
    %c10_i32 = arith.constant 10 : i32
    %83 = vector.broadcast %c10_i32 : i32 to vector<12x7xi32>
    %84 = arith.cmpi eq, %0, %83 : vector<12x7xi32>
    %c10 = arith.constant 10 : index
    %85 = memref.load %arg1[%c10] : memref<12xi32, #tpu.memory_space<smem>>
    %86 = vector.broadcast %85 : i32 to vector<12x7xi32>
    %87 = arith.cmpi eq, %1, %86 : vector<12x7xi32>
    %88 = arith.andi %84, %87 : vector<12x7xi1>
    %cst_10 = arith.constant 1.000000e+00 : f32
    %89 = vector.broadcast %cst_10 : f32 to vector<12x7xf32>
    %90 = arith.select %88, %89, %82 : vector<12x7xi1>, vector<12x7xf32>
    %c11_i32 = arith.constant 11 : i32
    %91 = vector.broadcast %c11_i32 : i32 to vector<12x7xi32>
    %92 = arith.cmpi eq, %0, %91 : vector<12x7xi32>
    %c11 = arith.constant 11 : index
    %93 = memref.load %arg1[%c11] : memref<12xi32, #tpu.memory_space<smem>>
    %94 = vector.broadcast %93 : i32 to vector<12x7xi32>
    %95 = arith.cmpi eq, %1, %94 : vector<12x7xi32>
    %96 = arith.andi %92, %95 : vector<12x7xi1>
    %cst_11 = arith.constant 1.000000e+00 : f32
    %97 = vector.broadcast %cst_11 : f32 to vector<12x7xf32>
    %98 = arith.select %96, %97, %90 : vector<12x7xi1>, vector<12x7xf32>
    %c0_12 = arith.constant 0 : index
    %c0_13 = arith.constant 0 : index
    %99 = vector.load %arg3[%c0_12, %c0_13] : memref<7x10xf32, #tpu.memory_space<vmem>>, vector<7x10xf32>
    %cst_14 = arith.constant dense<0.000000e+00> : vector<12x10xf32>
    %100 = tpu.matmul %98, %99, %cst_14 {dimension_numbers = #tpu.dot_dimension_numbers<[1], [0], [0], [1], [0, 0, 1, 1], [], []>} : vector<12x7xf32>, vector<7x10xf32>, vector<12x10xf32> -> vector<12x10xf32>
    %c0_15 = arith.constant 0 : index
    %c0_16 = arith.constant 0 : index
    %101 = vector.load %arg4[%c0_15, %c0_16] : memref<10x32xf32, #tpu.memory_space<vmem>>, vector<10x32xf32>
    %cst_17 = arith.constant dense<0.000000e+00> : vector<12x32xf32>
    %102 = tpu.matmul %100, %101, %cst_17 {dimension_numbers = #tpu.dot_dimension_numbers<[1], [0], [0], [1], [0, 0, 1, 1], [], []>} : vector<12x10xf32>, vector<10x32xf32>, vector<12x32xf32> -> vector<12x32xf32>
    %c0_18 = arith.constant 0 : index
    %c0_19 = arith.constant 0 : index
    %103 = vector.load %arg6[%c0_18, %c0_19] : memref<1x32xf32, #tpu.memory_space<vmem>>, vector<1x32xf32>
    %104 = vector.broadcast %103 : vector<1x32xf32> to vector<12x32xf32>
    %105 = arith.addf %102, %104 : vector<12x32xf32>
    %c0_20 = arith.constant 0 : index
    %c0_21 = arith.constant 0 : index
    %106 = vector.load %arg5[%c0_20, %c0_21] : memref<8x32xf32, #tpu.memory_space<vmem>>, vector<8x32xf32>
    %cst_22 = arith.constant 0.000000e+00 : f32
    %107 = vector.broadcast %cst_22 : f32 to vector<2x8xf32>
    %cst_23 = arith.constant 0.000000e+00 : f32
    %108 = vector.broadcast %cst_23 : f32 to vector<2x8xf32>
    %109 = vector.extract_strided_slice %105 {offsets = [0, 0], sizes = [2, 32], strides = [1, 1]} : vector<12x32xf32> to vector<2x32xf32>
    %cst_24 = arith.constant dense<0.000000e+00> : vector<2x32xf32>
    %110 = tpu.matmul %107, %106, %cst_24 {dimension_numbers = #tpu.dot_dimension_numbers<[1], [0], [0], [1], [0, 0, 1, 1], [], []>} : vector<2x8xf32>, vector<8x32xf32>, vector<2x32xf32> -> vector<2x32xf32>
    %111 = arith.addf %109, %110 : vector<2x32xf32>
    %112 = arith.negf %111 : vector<2x32xf32>
    %113 = math.exp %112 : vector<2x32xf32>
    %cst_25 = arith.constant 1.000000e+00 : f32
    %114 = vector.broadcast %cst_25 : f32 to vector<2x32xf32>
    %115 = arith.addf %114, %113 : vector<2x32xf32>
    %116 = arith.divf %114, %115 : vector<2x32xf32>
    %117 = math.tanh %111 : vector<2x32xf32>
    %118 = vector.extract_strided_slice %116 {offsets = [0, 0], sizes = [2, 8], strides = [1, 1]} : vector<2x32xf32> to vector<2x8xf32>
    %119 = vector.extract_strided_slice %116 {offsets = [0, 8], sizes = [2, 8], strides = [1, 1]} : vector<2x32xf32> to vector<2x8xf32>
    %120 = vector.extract_strided_slice %117 {offsets = [0, 16], sizes = [2, 8], strides = [1, 1]} : vector<2x32xf32> to vector<2x8xf32>
    %121 = vector.extract_strided_slice %116 {offsets = [0, 24], sizes = [2, 8], strides = [1, 1]} : vector<2x32xf32> to vector<2x8xf32>
    %122 = arith.mulf %119, %108 : vector<2x8xf32>
    %123 = arith.mulf %118, %120 : vector<2x8xf32>
    %124 = arith.addf %122, %123 : vector<2x8xf32>
    %125 = math.tanh %124 : vector<2x8xf32>
    %126 = arith.mulf %121, %125 : vector<2x8xf32>
    %127 = vector.extract_strided_slice %105 {offsets = [2, 0], sizes = [2, 32], strides = [1, 1]} : vector<12x32xf32> to vector<2x32xf32>
    %cst_26 = arith.constant dense<0.000000e+00> : vector<2x32xf32>
    %128 = tpu.matmul %126, %106, %cst_26 {dimension_numbers = #tpu.dot_dimension_numbers<[1], [0], [0], [1], [0, 0, 1, 1], [], []>} : vector<2x8xf32>, vector<8x32xf32>, vector<2x32xf32> -> vector<2x32xf32>
    %129 = arith.addf %127, %128 : vector<2x32xf32>
    %130 = arith.negf %129 : vector<2x32xf32>
    %131 = math.exp %130 : vector<2x32xf32>
    %cst_27 = arith.constant 1.000000e+00 : f32
    %132 = vector.broadcast %cst_27 : f32 to vector<2x32xf32>
    %133 = arith.addf %132, %131 : vector<2x32xf32>
    %134 = arith.divf %132, %133 : vector<2x32xf32>
    %135 = math.tanh %129 : vector<2x32xf32>
    %136 = vector.extract_strided_slice %134 {offsets = [0, 0], sizes = [2, 8], strides = [1, 1]} : vector<2x32xf32> to vector<2x8xf32>
    %137 = vector.extract_strided_slice %134 {offsets = [0, 8], sizes = [2, 8], strides = [1, 1]} : vector<2x32xf32> to vector<2x8xf32>
    %138 = vector.extract_strided_slice %135 {offsets = [0, 16], sizes = [2, 8], strides = [1, 1]} : vector<2x32xf32> to vector<2x8xf32>
    %139 = vector.extract_strided_slice %134 {offsets = [0, 24], sizes = [2, 8], strides = [1, 1]} : vector<2x32xf32> to vector<2x8xf32>
    %140 = arith.mulf %137, %124 : vector<2x8xf32>
    %141 = arith.mulf %136, %138 : vector<2x8xf32>
    %142 = arith.addf %140, %141 : vector<2x8xf32>
    %143 = math.tanh %142 : vector<2x8xf32>
    %144 = arith.mulf %139, %143 : vector<2x8xf32>
    %145 = vector.extract_strided_slice %105 {offsets = [4, 0], sizes = [2, 32], strides = [1, 1]} : vector<12x32xf32> to vector<2x32xf32>
    %cst_28 = arith.constant dense<0.000000e+00> : vector<2x32xf32>
    %146 = tpu.matmul %144, %106, %cst_28 {dimension_numbers = #tpu.dot_dimension_numbers<[1], [0], [0], [1], [0, 0, 1, 1], [], []>} : vector<2x8xf32>, vector<8x32xf32>, vector<2x32xf32> -> vector<2x32xf32>
    %147 = arith.addf %145, %146 : vector<2x32xf32>
    %148 = arith.negf %147 : vector<2x32xf32>
    %149 = math.exp %148 : vector<2x32xf32>
    %cst_29 = arith.constant 1.000000e+00 : f32
    %150 = vector.broadcast %cst_29 : f32 to vector<2x32xf32>
    %151 = arith.addf %150, %149 : vector<2x32xf32>
    %152 = arith.divf %150, %151 : vector<2x32xf32>
    %153 = math.tanh %147 : vector<2x32xf32>
    %154 = vector.extract_strided_slice %152 {offsets = [0, 0], sizes = [2, 8], strides = [1, 1]} : vector<2x32xf32> to vector<2x8xf32>
    %155 = vector.extract_strided_slice %152 {offsets = [0, 8], sizes = [2, 8], strides = [1, 1]} : vector<2x32xf32> to vector<2x8xf32>
    %156 = vector.extract_strided_slice %153 {offsets = [0, 16], sizes = [2, 8], strides = [1, 1]} : vector<2x32xf32> to vector<2x8xf32>
    %157 = vector.extract_strided_slice %152 {offsets = [0, 24], sizes = [2, 8], strides = [1, 1]} : vector<2x32xf32> to vector<2x8xf32>
    %158 = arith.mulf %155, %142 : vector<2x8xf32>
    %159 = arith.mulf %154, %156 : vector<2x8xf32>
    %160 = arith.addf %158, %159 : vector<2x8xf32>
    %161 = math.tanh %160 : vector<2x8xf32>
    %162 = arith.mulf %157, %161 : vector<2x8xf32>
    %163 = vector.extract_strided_slice %105 {offsets = [6, 0], sizes = [2, 32], strides = [1, 1]} : vector<12x32xf32> to vector<2x32xf32>
    %cst_30 = arith.constant dense<0.000000e+00> : vector<2x32xf32>
    %164 = tpu.matmul %162, %106, %cst_30 {dimension_numbers = #tpu.dot_dimension_numbers<[1], [0], [0], [1], [0, 0, 1, 1], [], []>} : vector<2x8xf32>, vector<8x32xf32>, vector<2x32xf32> -> vector<2x32xf32>
    %165 = arith.addf %163, %164 : vector<2x32xf32>
    %166 = arith.negf %165 : vector<2x32xf32>
    %167 = math.exp %166 : vector<2x32xf32>
    %cst_31 = arith.constant 1.000000e+00 : f32
    %168 = vector.broadcast %cst_31 : f32 to vector<2x32xf32>
    %169 = arith.addf %168, %167 : vector<2x32xf32>
    %170 = arith.divf %168, %169 : vector<2x32xf32>
    %171 = math.tanh %165 : vector<2x32xf32>
    %172 = vector.extract_strided_slice %170 {offsets = [0, 0], sizes = [2, 8], strides = [1, 1]} : vector<2x32xf32> to vector<2x8xf32>
    %173 = vector.extract_strided_slice %170 {offsets = [0, 8], sizes = [2, 8], strides = [1, 1]} : vector<2x32xf32> to vector<2x8xf32>
    %174 = vector.extract_strided_slice %171 {offsets = [0, 16], sizes = [2, 8], strides = [1, 1]} : vector<2x32xf32> to vector<2x8xf32>
    %175 = vector.extract_strided_slice %170 {offsets = [0, 24], sizes = [2, 8], strides = [1, 1]} : vector<2x32xf32> to vector<2x8xf32>
    %176 = arith.mulf %173, %160 : vector<2x8xf32>
    %177 = arith.mulf %172, %174 : vector<2x8xf32>
    %178 = arith.addf %176, %177 : vector<2x8xf32>
    %179 = math.tanh %178 : vector<2x8xf32>
    %180 = arith.mulf %175, %179 : vector<2x8xf32>
    %181 = vector.extract_strided_slice %105 {offsets = [8, 0], sizes = [2, 32], strides = [1, 1]} : vector<12x32xf32> to vector<2x32xf32>
    %cst_32 = arith.constant dense<0.000000e+00> : vector<2x32xf32>
    %182 = tpu.matmul %180, %106, %cst_32 {dimension_numbers = #tpu.dot_dimension_numbers<[1], [0], [0], [1], [0, 0, 1, 1], [], []>} : vector<2x8xf32>, vector<8x32xf32>, vector<2x32xf32> -> vector<2x32xf32>
    %183 = arith.addf %181, %182 : vector<2x32xf32>
    %184 = arith.negf %183 : vector<2x32xf32>
    %185 = math.exp %184 : vector<2x32xf32>
    %cst_33 = arith.constant 1.000000e+00 : f32
    %186 = vector.broadcast %cst_33 : f32 to vector<2x32xf32>
    %187 = arith.addf %186, %185 : vector<2x32xf32>
    %188 = arith.divf %186, %187 : vector<2x32xf32>
    %189 = math.tanh %183 : vector<2x32xf32>
    %190 = vector.extract_strided_slice %188 {offsets = [0, 0], sizes = [2, 8], strides = [1, 1]} : vector<2x32xf32> to vector<2x8xf32>
    %191 = vector.extract_strided_slice %188 {offsets = [0, 8], sizes = [2, 8], strides = [1, 1]} : vector<2x32xf32> to vector<2x8xf32>
    %192 = vector.extract_strided_slice %189 {offsets = [0, 16], sizes = [2, 8], strides = [1, 1]} : vector<2x32xf32> to vector<2x8xf32>
    %193 = vector.extract_strided_slice %188 {offsets = [0, 24], sizes = [2, 8], strides = [1, 1]} : vector<2x32xf32> to vector<2x8xf32>
    %194 = arith.mulf %191, %178 : vector<2x8xf32>
    %195 = arith.mulf %190, %192 : vector<2x8xf32>
    %196 = arith.addf %194, %195 : vector<2x8xf32>
    %197 = math.tanh %196 : vector<2x8xf32>
    %198 = arith.mulf %193, %197 : vector<2x8xf32>
    %199 = vector.extract_strided_slice %105 {offsets = [10, 0], sizes = [2, 32], strides = [1, 1]} : vector<12x32xf32> to vector<2x32xf32>
    %cst_34 = arith.constant dense<0.000000e+00> : vector<2x32xf32>
    %200 = tpu.matmul %198, %106, %cst_34 {dimension_numbers = #tpu.dot_dimension_numbers<[1], [0], [0], [1], [0, 0, 1, 1], [], []>} : vector<2x8xf32>, vector<8x32xf32>, vector<2x32xf32> -> vector<2x32xf32>
    %201 = arith.addf %199, %200 : vector<2x32xf32>
    %202 = arith.negf %201 : vector<2x32xf32>
    %203 = math.exp %202 : vector<2x32xf32>
    %cst_35 = arith.constant 1.000000e+00 : f32
    %204 = vector.broadcast %cst_35 : f32 to vector<2x32xf32>
    %205 = arith.addf %204, %203 : vector<2x32xf32>
    %206 = arith.divf %204, %205 : vector<2x32xf32>
    %207 = math.tanh %201 : vector<2x32xf32>
    %208 = vector.extract_strided_slice %206 {offsets = [0, 0], sizes = [2, 8], strides = [1, 1]} : vector<2x32xf32> to vector<2x8xf32>
    %209 = vector.extract_strided_slice %206 {offsets = [0, 8], sizes = [2, 8], strides = [1, 1]} : vector<2x32xf32> to vector<2x8xf32>
    %210 = vector.extract_strided_slice %207 {offsets = [0, 16], sizes = [2, 8], strides = [1, 1]} : vector<2x32xf32> to vector<2x8xf32>
    %211 = vector.extract_strided_slice %206 {offsets = [0, 24], sizes = [2, 8], strides = [1, 1]} : vector<2x32xf32> to vector<2x8xf32>
    %212 = arith.mulf %209, %196 : vector<2x8xf32>
    %213 = arith.mulf %208, %210 : vector<2x8xf32>
    %214 = arith.addf %212, %213 : vector<2x8xf32>
    %215 = math.tanh %214 : vector<2x8xf32>
    %216 = arith.mulf %211, %215 : vector<2x8xf32>
    %c0_36 = arith.constant 0 : index
    %c0_37 = arith.constant 0 : index
    %217 = vector.load %arg7[%c0_36, %c0_37] : memref<6x10xf32, #tpu.memory_space<vmem>>, vector<6x10xf32>
    %c0_38 = arith.constant 0 : index
    %c0_39 = arith.constant 0 : index
    %218 = vector.load %arg8[%c0_38, %c0_39] : memref<10x32xf32, #tpu.memory_space<vmem>>, vector<10x32xf32>
    %cst_40 = arith.constant dense<0.000000e+00> : vector<6x32xf32>
    %219 = tpu.matmul %217, %218, %cst_40 {dimension_numbers = #tpu.dot_dimension_numbers<[1], [0], [0], [1], [0, 0, 1, 1], [], []>} : vector<6x10xf32>, vector<10x32xf32>, vector<6x32xf32> -> vector<6x32xf32>
    %c0_41 = arith.constant 0 : index
    %c0_42 = arith.constant 0 : index
    %220 = vector.load %arg9[%c0_41, %c0_42] : memref<8x32xf32, #tpu.memory_space<vmem>>, vector<8x32xf32>
    %c0_43 = arith.constant 0 : index
    %c0_44 = arith.constant 0 : index
    %221 = vector.load %arg10[%c0_43, %c0_44] : memref<1x32xf32, #tpu.memory_space<vmem>>, vector<1x32xf32>
    %c0_45 = arith.constant 0 : index
    %c0_46 = arith.constant 0 : index
    %222 = vector.load %arg11[%c0_45, %c0_46] : memref<8x6xf32, #tpu.memory_space<vmem>>, vector<8x6xf32>
    %c0_47 = arith.constant 0 : index
    %c0_48 = arith.constant 0 : index
    %223 = vector.load %arg12[%c0_47, %c0_48] : memref<1x6xf32, #tpu.memory_space<vmem>>, vector<1x6xf32>
    %224 = tpu.iota {dimensions = array<i32: 0>} : vector<2x6xi32>
    %225 = tpu.iota {dimensions = array<i32: 1>} : vector<2x6xi32>
    %cst_49 = arith.constant 0.000000e+00 : f32
    %226 = vector.broadcast %cst_49 : f32 to vector<2x6xf32>
    %c0_i32_50 = arith.constant 0 : i32
    %227 = vector.broadcast %c0_i32_50 : i32 to vector<2x6xi32>
    %228 = arith.cmpi eq, %224, %227 : vector<2x6xi32>
    %c0_51 = arith.constant 0 : index
    %229 = memref.load %arg2[%c0_51] : memref<10xi32, #tpu.memory_space<smem>>
    %230 = vector.broadcast %229 : i32 to vector<2x6xi32>
    %231 = arith.cmpi eq, %225, %230 : vector<2x6xi32>
    %232 = arith.andi %228, %231 : vector<2x6xi1>
    %cst_52 = arith.constant 1.000000e+00 : f32
    %233 = vector.broadcast %cst_52 : f32 to vector<2x6xf32>
    %234 = arith.select %232, %233, %226 : vector<2x6xi1>, vector<2x6xf32>
    %c1_i32_53 = arith.constant 1 : i32
    %235 = vector.broadcast %c1_i32_53 : i32 to vector<2x6xi32>
    %236 = arith.cmpi eq, %224, %235 : vector<2x6xi32>
    %c1_54 = arith.constant 1 : index
    %237 = memref.load %arg2[%c1_54] : memref<10xi32, #tpu.memory_space<smem>>
    %238 = vector.broadcast %237 : i32 to vector<2x6xi32>
    %239 = arith.cmpi eq, %225, %238 : vector<2x6xi32>
    %240 = arith.andi %236, %239 : vector<2x6xi1>
    %cst_55 = arith.constant 1.000000e+00 : f32
    %241 = vector.broadcast %cst_55 : f32 to vector<2x6xf32>
    %242 = arith.select %240, %241, %234 : vector<2x6xi1>, vector<2x6xf32>
    %cst_56 = arith.constant 0.000000e+00 : f32
    %243 = vector.broadcast %cst_56 : f32 to vector<2x6xf32>
    %c0_i32_57 = arith.constant 0 : i32
    %244 = vector.broadcast %c0_i32_57 : i32 to vector<2x6xi32>
    %245 = arith.cmpi eq, %224, %244 : vector<2x6xi32>
    %c2_58 = arith.constant 2 : index
    %246 = memref.load %arg2[%c2_58] : memref<10xi32, #tpu.memory_space<smem>>
    %247 = vector.broadcast %246 : i32 to vector<2x6xi32>
    %248 = arith.cmpi eq, %225, %247 : vector<2x6xi32>
    %249 = arith.andi %245, %248 : vector<2x6xi1>
    %cst_59 = arith.constant 1.000000e+00 : f32
    %250 = vector.broadcast %cst_59 : f32 to vector<2x6xf32>
    %251 = arith.select %249, %250, %243 : vector<2x6xi1>, vector<2x6xf32>
    %c1_i32_60 = arith.constant 1 : i32
    %252 = vector.broadcast %c1_i32_60 : i32 to vector<2x6xi32>
    %253 = arith.cmpi eq, %224, %252 : vector<2x6xi32>
    %c3_61 = arith.constant 3 : index
    %254 = memref.load %arg2[%c3_61] : memref<10xi32, #tpu.memory_space<smem>>
    %255 = vector.broadcast %254 : i32 to vector<2x6xi32>
    %256 = arith.cmpi eq, %225, %255 : vector<2x6xi32>
    %257 = arith.andi %253, %256 : vector<2x6xi1>
    %cst_62 = arith.constant 1.000000e+00 : f32
    %258 = vector.broadcast %cst_62 : f32 to vector<2x6xf32>
    %259 = arith.select %257, %258, %251 : vector<2x6xi1>, vector<2x6xf32>
    %cst_63 = arith.constant 0.000000e+00 : f32
    %260 = vector.broadcast %cst_63 : f32 to vector<2x6xf32>
    %c0_i32_64 = arith.constant 0 : i32
    %261 = vector.broadcast %c0_i32_64 : i32 to vector<2x6xi32>
    %262 = arith.cmpi eq, %224, %261 : vector<2x6xi32>
    %c4_65 = arith.constant 4 : index
    %263 = memref.load %arg2[%c4_65] : memref<10xi32, #tpu.memory_space<smem>>
    %264 = vector.broadcast %263 : i32 to vector<2x6xi32>
    %265 = arith.cmpi eq, %225, %264 : vector<2x6xi32>
    %266 = arith.andi %262, %265 : vector<2x6xi1>
    %cst_66 = arith.constant 1.000000e+00 : f32
    %267 = vector.broadcast %cst_66 : f32 to vector<2x6xf32>
    %268 = arith.select %266, %267, %260 : vector<2x6xi1>, vector<2x6xf32>
    %c1_i32_67 = arith.constant 1 : i32
    %269 = vector.broadcast %c1_i32_67 : i32 to vector<2x6xi32>
    %270 = arith.cmpi eq, %224, %269 : vector<2x6xi32>
    %c5_68 = arith.constant 5 : index
    %271 = memref.load %arg2[%c5_68] : memref<10xi32, #tpu.memory_space<smem>>
    %272 = vector.broadcast %271 : i32 to vector<2x6xi32>
    %273 = arith.cmpi eq, %225, %272 : vector<2x6xi32>
    %274 = arith.andi %270, %273 : vector<2x6xi1>
    %cst_69 = arith.constant 1.000000e+00 : f32
    %275 = vector.broadcast %cst_69 : f32 to vector<2x6xf32>
    %276 = arith.select %274, %275, %268 : vector<2x6xi1>, vector<2x6xf32>
    %cst_70 = arith.constant 0.000000e+00 : f32
    %277 = vector.broadcast %cst_70 : f32 to vector<2x6xf32>
    %c0_i32_71 = arith.constant 0 : i32
    %278 = vector.broadcast %c0_i32_71 : i32 to vector<2x6xi32>
    %279 = arith.cmpi eq, %224, %278 : vector<2x6xi32>
    %c6_72 = arith.constant 6 : index
    %280 = memref.load %arg2[%c6_72] : memref<10xi32, #tpu.memory_space<smem>>
    %281 = vector.broadcast %280 : i32 to vector<2x6xi32>
    %282 = arith.cmpi eq, %225, %281 : vector<2x6xi32>
    %283 = arith.andi %279, %282 : vector<2x6xi1>
    %cst_73 = arith.constant 1.000000e+00 : f32
    %284 = vector.broadcast %cst_73 : f32 to vector<2x6xf32>
    %285 = arith.select %283, %284, %277 : vector<2x6xi1>, vector<2x6xf32>
    %c1_i32_74 = arith.constant 1 : i32
    %286 = vector.broadcast %c1_i32_74 : i32 to vector<2x6xi32>
    %287 = arith.cmpi eq, %224, %286 : vector<2x6xi32>
    %c7_75 = arith.constant 7 : index
    %288 = memref.load %arg2[%c7_75] : memref<10xi32, #tpu.memory_space<smem>>
    %289 = vector.broadcast %288 : i32 to vector<2x6xi32>
    %290 = arith.cmpi eq, %225, %289 : vector<2x6xi32>
    %291 = arith.andi %287, %290 : vector<2x6xi1>
    %cst_76 = arith.constant 1.000000e+00 : f32
    %292 = vector.broadcast %cst_76 : f32 to vector<2x6xf32>
    %293 = arith.select %291, %292, %285 : vector<2x6xi1>, vector<2x6xf32>
    %cst_77 = arith.constant 0.000000e+00 : f32
    %294 = vector.broadcast %cst_77 : f32 to vector<2x6xf32>
    %c0_78 = arith.constant 0 : index
    %c0_79 = arith.constant 0 : index
    %c0_80 = arith.constant 0 : index
    %295 = vector.load %arg13[%c0_78, %c0_79, %c0_80] : memref<5x2x6xf32, #tpu.memory_space<vmem>>, vector<1x2x6xf32>
    %296 = vector.shape_cast %295 : vector<1x2x6xf32> to vector<2x6xf32>
    %297 = vector.shape_cast %294 : vector<2x6xf32> to vector<1x2x6xf32>
    tpu.vector_store %arg13[%c0_78, %c0_79, %c0_80], %297 {strides = array<i32>} : memref<5x2x6xf32, #tpu.memory_space<vmem>>, vector<1x2x6xf32>,
    %cst_81 = arith.constant dense<0.000000e+00> : vector<2x32xf32>
    %298 = tpu.matmul %216, %220, %cst_81 {dimension_numbers = #tpu.dot_dimension_numbers<[1], [0], [0], [1], [0, 0, 1, 1], [], []>} : vector<2x8xf32>, vector<8x32xf32>, vector<2x32xf32> -> vector<2x32xf32>
    %cst_82 = arith.constant dense<0.000000e+00> : vector<2x32xf32>
    %299 = tpu.matmul %242, %219, %cst_82 {dimension_numbers = #tpu.dot_dimension_numbers<[1], [0], [0], [1], [0, 0, 1, 1], [], []>} : vector<2x6xf32>, vector<6x32xf32>, vector<2x32xf32> -> vector<2x32xf32>
    %300 = arith.addf %298, %299 : vector<2x32xf32>
    %301 = vector.broadcast %221 : vector<1x32xf32> to vector<2x32xf32>
    %302 = arith.addf %300, %301 : vector<2x32xf32>
    %303 = arith.negf %302 : vector<2x32xf32>
    %304 = math.exp %303 : vector<2x32xf32>
    %cst_83 = arith.constant 1.000000e+00 : f32
    %305 = vector.broadcast %cst_83 : f32 to vector<2x32xf32>
    %306 = arith.addf %305, %304 : vector<2x32xf32>
    %307 = arith.divf %305, %306 : vector<2x32xf32>
    %308 = math.tanh %302 : vector<2x32xf32>
    %309 = vector.extract_strided_slice %307 {offsets = [0, 0], sizes = [2, 8], strides = [1, 1]} : vector<2x32xf32> to vector<2x8xf32>
    %310 = vector.extract_strided_slice %307 {offsets = [0, 8], sizes = [2, 8], strides = [1, 1]} : vector<2x32xf32> to vector<2x8xf32>
    %311 = vector.extract_strided_slice %308 {offsets = [0, 16], sizes = [2, 8], strides = [1, 1]} : vector<2x32xf32> to vector<2x8xf32>
    %312 = vector.extract_strided_slice %307 {offsets = [0, 24], sizes = [2, 8], strides = [1, 1]} : vector<2x32xf32> to vector<2x8xf32>
    %313 = arith.mulf %310, %214 : vector<2x8xf32>
    %314 = arith.mulf %309, %311 : vector<2x8xf32>
    %315 = arith.addf %313, %314 : vector<2x8xf32>
    %316 = math.tanh %315 : vector<2x8xf32>
    %317 = arith.mulf %312, %316 : vector<2x8xf32>
    %cst_84 = arith.constant dense<0.000000e+00> : vector<2x6xf32>
    %318 = tpu.matmul %317, %222, %cst_84 {dimension_numbers = #tpu.dot_dimension_numbers<[1], [0], [0], [1], [0, 0, 1, 1], [], []>} : vector<2x8xf32>, vector<8x6xf32>, vector<2x6xf32> -> vector<2x6xf32>
    %319 = vector.broadcast %223 : vector<1x6xf32> to vector<2x6xf32>
    %320 = arith.addf %318, %319 : vector<2x6xf32>
    %cst_85 = arith.constant dense<0xFF800000> : vector<2xf32>
    %321 = vector.multi_reduction <maximumf>, %320, %cst_85 [1] : vector<2x6xf32> to vector<2xf32>
    %322 = vector.shape_cast %321 : vector<2xf32> to vector<2x1xf32>
    %323 = vector.broadcast %322 : vector<2x1xf32> to vector<2x6xf32>
    %324 = arith.subf %320, %323 : vector<2x6xf32>
    %325 = math.exp %324 : vector<2x6xf32>
    %cst_86 = arith.constant dense<0.000000e+00> : vector<2xf32>
    %326 = vector.multi_reduction <add>, %325, %cst_86 [1] : vector<2x6xf32> to vector<2xf32>
    %327 = vector.shape_cast %326 : vector<2xf32> to vector<2x1xf32>
    %328 = math.log %327 : vector<2x1xf32>
    %329 = vector.broadcast %322 : vector<2x1xf32> to vector<2x6xf32>
    %330 = arith.subf %320, %329 : vector<2x6xf32>
    %331 = vector.broadcast %328 : vector<2x1xf32> to vector<2x6xf32>
    %332 = arith.subf %330, %331 : vector<2x6xf32>
    %c1_87 = arith.constant 1 : index
    %c0_88 = arith.constant 0 : index
    %c0_89 = arith.constant 0 : index
    %333 = vector.load %arg13[%c1_87, %c0_88, %c0_89] : memref<5x2x6xf32, #tpu.memory_space<vmem>>, vector<1x2x6xf32>
    %334 = vector.shape_cast %333 : vector<1x2x6xf32> to vector<2x6xf32>
    %335 = vector.shape_cast %332 : vector<2x6xf32> to vector<1x2x6xf32>
    tpu.vector_store %arg13[%c1_87, %c0_88, %c0_89], %335 {strides = array<i32>} : memref<5x2x6xf32, #tpu.memory_space<vmem>>, vector<1x2x6xf32>,
    %336 = vector.broadcast %322 : vector<2x1xf32> to vector<2x6xf32>
    %337 = arith.cmpf oeq, %320, %336 : vector<2x6xf32>
    %c6_i32_90 = arith.constant 6 : i32
    %338 = vector.broadcast %c6_i32_90 : i32 to vector<2x6xi32>
    %339 = arith.select %337, %225, %338 : vector<2x6xi1>, vector<2x6xi32>
    %cst_91 = arith.constant dense<2147483647> : vector<2xi32>
    %340 = vector.multi_reduction <minsi>, %339, %cst_91 [1] : vector<2x6xi32> to vector<2xi32>
    %341 = vector.shape_cast %340 : vector<2xi32> to vector<2x1xi32>
    %342 = vector.broadcast %341 : vector<2x1xi32> to vector<2x6xi32>
    %343 = arith.cmpi eq, %225, %342 : vector<2x6xi32>
    %344 = arith.extui %343 : vector<2x6xi1> to vector<2x6xi32>
    %345 = arith.sitofp %344 : vector<2x6xi32> to vector<2x6xf32>
    %c1_92 = arith.constant 1 : index
    %346 = memref.load %arg0[%c1_92] : memref<5xi32, #tpu.memory_space<smem>>
    %c0_i32_93 = arith.constant 0 : i32
    %347 = arith.cmpi sgt, %346, %c0_i32_93 : i32
    %348 = arith.select %347, %259, %345 : vector<2x6xf32>
    %cst_94 = arith.constant dense<0.000000e+00> : vector<2x32xf32>
    %349 = tpu.matmul %317, %220, %cst_94 {dimension_numbers = #tpu.dot_dimension_numbers<[1], [0], [0], [1], [0, 0, 1, 1], [], []>} : vector<2x8xf32>, vector<8x32xf32>, vector<2x32xf32> -> vector<2x32xf32>
    %cst_95 = arith.constant dense<0.000000e+00> : vector<2x32xf32>
    %350 = tpu.matmul %348, %219, %cst_95 {dimension_numbers = #tpu.dot_dimension_numbers<[1], [0], [0], [1], [0, 0, 1, 1], [], []>} : vector<2x6xf32>, vector<6x32xf32>, vector<2x32xf32> -> vector<2x32xf32>
    %351 = arith.addf %349, %350 : vector<2x32xf32>
    %352 = vector.broadcast %221 : vector<1x32xf32> to vector<2x32xf32>
    %353 = arith.addf %351, %352 : vector<2x32xf32>
    %354 = arith.negf %353 : vector<2x32xf32>
    %355 = math.exp %354 : vector<2x32xf32>
    %cst_96 = arith.constant 1.000000e+00 : f32
    %356 = vector.broadcast %cst_96 : f32 to vector<2x32xf32>
    %357 = arith.addf %356, %355 : vector<2x32xf32>
    %358 = arith.divf %356, %357 : vector<2x32xf32>
    %359 = math.tanh %353 : vector<2x32xf32>
    %360 = vector.extract_strided_slice %358 {offsets = [0, 0], sizes = [2, 8], strides = [1, 1]} : vector<2x32xf32> to vector<2x8xf32>
    %361 = vector.extract_strided_slice %358 {offsets = [0, 8], sizes = [2, 8], strides = [1, 1]} : vector<2x32xf32> to vector<2x8xf32>
    %362 = vector.extract_strided_slice %359 {offsets = [0, 16], sizes = [2, 8], strides = [1, 1]} : vector<2x32xf32> to vector<2x8xf32>
    %363 = vector.extract_strided_slice %358 {offsets = [0, 24], sizes = [2, 8], strides = [1, 1]} : vector<2x32xf32> to vector<2x8xf32>
    %364 = arith.mulf %361, %315 : vector<2x8xf32>
    %365 = arith.mulf %360, %362 : vector<2x8xf32>
    %366 = arith.addf %364, %365 : vector<2x8xf32>
    %367 = math.tanh %366 : vector<2x8xf32>
    %368 = arith.mulf %363, %367 : vector<2x8xf32>
    %cst_97 = arith.constant dense<0.000000e+00> : vector<2x6xf32>
    %369 = tpu.matmul %368, %222, %cst_97 {dimension_numbers = #tpu.dot_dimension_numbers<[1], [0], [0], [1], [0, 0, 1, 1], [], []>} : vector<2x8xf32>, vector<8x6xf32>, vector<2x6xf32> -> vector<2x6xf32>
    %370 = vector.broadcast %223 : vector<1x6xf32> to vector<2x6xf32>
    %371 = arith.addf %369, %370 : vector<2x6xf32>
    %cst_98 = arith.constant dense<0xFF800000> : vector<2xf32>
    %372 = vector.multi_reduction <maximumf>, %371, %cst_98 [1] : vector<2x6xf32> to vector<2xf32>
    %373 = vector.shape_cast %372 : vector<2xf32> to vector<2x1xf32>
    %374 = vector.broadcast %373 : vector<2x1xf32> to vector<2x6xf32>
    %375 = arith.subf %371, %374 : vector<2x6xf32>
    %376 = math.exp %375 : vector<2x6xf32>
    %cst_99 = arith.constant dense<0.000000e+00> : vector<2xf32>
    %377 = vector.multi_reduction <add>, %376, %cst_99 [1] : vector<2x6xf32> to vector<2xf32>
    %378 = vector.shape_cast %377 : vector<2xf32> to vector<2x1xf32>
    %379 = math.log %378 : vector<2x1xf32>
    %380 = vector.broadcast %373 : vector<2x1xf32> to vector<2x6xf32>
    %381 = arith.subf %371, %380 : vector<2x6xf32>
    %382 = vector.broadcast %379 : vector<2x1xf32> to vector<2x6xf32>
    %383 = arith.subf %381, %382 : vector<2x6xf32>
    %c2_100 = arith.constant 2 : index
    %c0_101 = arith.constant 0 : index
    %c0_102 = arith.constant 0 : index
    %384 = vector.load %arg13[%c2_100, %c0_101, %c0_102] : memref<5x2x6xf32, #tpu.memory_space<vmem>>, vector<1x2x6xf32>
    %385 = vector.shape_cast %384 : vector<1x2x6xf32> to vector<2x6xf32>
    %386 = vector.shape_cast %383 : vector<2x6xf32> to vector<1x2x6xf32>
    tpu.vector_store %arg13[%c2_100, %c0_101, %c0_102], %386 {strides = array<i32>} : memref<5x2x6xf32, #tpu.memory_space<vmem>>, vector<1x2x6xf32>,
    %387 = vector.broadcast %373 : vector<2x1xf32> to vector<2x6xf32>
    %388 = arith.cmpf oeq, %371, %387 : vector<2x6xf32>
    %c6_i32_103 = arith.constant 6 : i32
    %389 = vector.broadcast %c6_i32_103 : i32 to vector<2x6xi32>
    %390 = arith.select %388, %225, %389 : vector<2x6xi1>, vector<2x6xi32>
    %cst_104 = arith.constant dense<2147483647> : vector<2xi32>
    %391 = vector.multi_reduction <minsi>, %390, %cst_104 [1] : vector<2x6xi32> to vector<2xi32>
    %392 = vector.shape_cast %391 : vector<2xi32> to vector<2x1xi32>
    %393 = vector.broadcast %392 : vector<2x1xi32> to vector<2x6xi32>
    %394 = arith.cmpi eq, %225, %393 : vector<2x6xi32>
    %395 = arith.extui %394 : vector<2x6xi1> to vector<2x6xi32>
    %396 = arith.sitofp %395 : vector<2x6xi32> to vector<2x6xf32>
    %c2_105 = arith.constant 2 : index
    %397 = memref.load %arg0[%c2_105] : memref<5xi32, #tpu.memory_space<smem>>
    %c0_i32_106 = arith.constant 0 : i32
    %398 = arith.cmpi sgt, %397, %c0_i32_106 : i32
    %399 = arith.select %398, %276, %396 : vector<2x6xf32>
    %cst_107 = arith.constant dense<0.000000e+00> : vector<2x32xf32>
    %400 = tpu.matmul %368, %220, %cst_107 {dimension_numbers = #tpu.dot_dimension_numbers<[1], [0], [0], [1], [0, 0, 1, 1], [], []>} : vector<2x8xf32>, vector<8x32xf32>, vector<2x32xf32> -> vector<2x32xf32>
    %cst_108 = arith.constant dense<0.000000e+00> : vector<2x32xf32>
    %401 = tpu.matmul %399, %219, %cst_108 {dimension_numbers = #tpu.dot_dimension_numbers<[1], [0], [0], [1], [0, 0, 1, 1], [], []>} : vector<2x6xf32>, vector<6x32xf32>, vector<2x32xf32> -> vector<2x32xf32>
    %402 = arith.addf %400, %401 : vector<2x32xf32>
    %403 = vector.broadcast %221 : vector<1x32xf32> to vector<2x32xf32>
    %404 = arith.addf %402, %403 : vector<2x32xf32>
    %405 = arith.negf %404 : vector<2x32xf32>
    %406 = math.exp %405 : vector<2x32xf32>
    %cst_109 = arith.constant 1.000000e+00 : f32
    %407 = vector.broadcast %cst_109 : f32 to vector<2x32xf32>
    %408 = arith.addf %407, %406 : vector<2x32xf32>
    %409 = arith.divf %407, %408 : vector<2x32xf32>
    %410 = math.tanh %404 : vector<2x32xf32>
    %411 = vector.extract_strided_slice %409 {offsets = [0, 0], sizes = [2, 8], strides = [1, 1]} : vector<2x32xf32> to vector<2x8xf32>
    %412 = vector.extract_strided_slice %409 {offsets = [0, 8], sizes = [2, 8], strides = [1, 1]} : vector<2x32xf32> to vector<2x8xf32>
    %413 = vector.extract_strided_slice %410 {offsets = [0, 16], sizes = [2, 8], strides = [1, 1]} : vector<2x32xf32> to vector<2x8xf32>
    %414 = vector.extract_strided_slice %409 {offsets = [0, 24], sizes = [2, 8], strides = [1, 1]} : vector<2x32xf32> to vector<2x8xf32>
    %415 = arith.mulf %412, %366 : vector<2x8xf32>
    %416 = arith.mulf %411, %413 : vector<2x8xf32>
    %417 = arith.addf %415, %416 : vector<2x8xf32>
    %418 = math.tanh %417 : vector<2x8xf32>
    %419 = arith.mulf %414, %418 : vector<2x8xf32>
    %cst_110 = arith.constant dense<0.000000e+00> : vector<2x6xf32>
    %420 = tpu.matmul %419, %222, %cst_110 {dimension_numbers = #tpu.dot_dimension_numbers<[1], [0], [0], [1], [0, 0, 1, 1], [], []>} : vector<2x8xf32>, vector<8x6xf32>, vector<2x6xf32> -> vector<2x6xf32>
    %421 = vector.broadcast %223 : vector<1x6xf32> to vector<2x6xf32>
    %422 = arith.addf %420, %421 : vector<2x6xf32>
    %cst_111 = arith.constant dense<0xFF800000> : vector<2xf32>
    %423 = vector.multi_reduction <maximumf>, %422, %cst_111 [1] : vector<2x6xf32> to vector<2xf32>
    %424 = vector.shape_cast %423 : vector<2xf32> to vector<2x1xf32>
    %425 = vector.broadcast %424 : vector<2x1xf32> to vector<2x6xf32>
    %426 = arith.subf %422, %425 : vector<2x6xf32>
    %427 = math.exp %426 : vector<2x6xf32>
    %cst_112 = arith.constant dense<0.000000e+00> : vector<2xf32>
    %428 = vector.multi_reduction <add>, %427, %cst_112 [1] : vector<2x6xf32> to vector<2xf32>
    %429 = vector.shape_cast %428 : vector<2xf32> to vector<2x1xf32>
    %430 = math.log %429 : vector<2x1xf32>
    %431 = vector.broadcast %424 : vector<2x1xf32> to vector<2x6xf32>
    %432 = arith.subf %422, %431 : vector<2x6xf32>
    %433 = vector.broadcast %430 : vector<2x1xf32> to vector<2x6xf32>
    %434 = arith.subf %432, %433 : vector<2x6xf32>
    %c3_113 = arith.constant 3 : index
    %c0_114 = arith.constant 0 : index
    %c0_115 = arith.constant 0 : index
    %435 = vector.load %arg13[%c3_113, %c0_114, %c0_115] : memref<5x2x6xf32, #tpu.memory_space<vmem>>, vector<1x2x6xf32>
    %436 = vector.shape_cast %435 : vector<1x2x6xf32> to vector<2x6xf32>
    %437 = vector.shape_cast %434 : vector<2x6xf32> to vector<1x2x6xf32>
    tpu.vector_store %arg13[%c3_113, %c0_114, %c0_115], %437 {strides = array<i32>} : memref<5x2x6xf32, #tpu.memory_space<vmem>>, vector<1x2x6xf32>,
    %438 = vector.broadcast %424 : vector<2x1xf32> to vector<2x6xf32>
    %439 = arith.cmpf oeq, %422, %438 : vector<2x6xf32>
    %c6_i32_116 = arith.constant 6 : i32
    %440 = vector.broadcast %c6_i32_116 : i32 to vector<2x6xi32>
    %441 = arith.select %439, %225, %440 : vector<2x6xi1>, vector<2x6xi32>
    %cst_117 = arith.constant dense<2147483647> : vector<2xi32>
    %442 = vector.multi_reduction <minsi>, %441, %cst_117 [1] : vector<2x6xi32> to vector<2xi32>
    %443 = vector.shape_cast %442 : vector<2xi32> to vector<2x1xi32>
    %444 = vector.broadcast %443 : vector<2x1xi32> to vector<2x6xi32>
    %445 = arith.cmpi eq, %225, %444 : vector<2x6xi32>
    %446 = arith.extui %445 : vector<2x6xi1> to vector<2x6xi32>
    %447 = arith.sitofp %446 : vector<2x6xi32> to vector<2x6xf32>
    %c3_118 = arith.constant 3 : index
    %448 = memref.load %arg0[%c3_118] : memref<5xi32, #tpu.memory_space<smem>>
    %c0_i32_119 = arith.constant 0 : i32
    %449 = arith.cmpi sgt, %448, %c0_i32_119 : i32
    %450 = arith.select %449, %293, %447 : vector<2x6xf32>
    %cst_120 = arith.constant dense<0.000000e+00> : vector<2x32xf32>
    %451 = tpu.matmul %419, %220, %cst_120 {dimension_numbers = #tpu.dot_dimension_numbers<[1], [0], [0], [1], [0, 0, 1, 1], [], []>} : vector<2x8xf32>, vector<8x32xf32>, vector<2x32xf32> -> vector<2x32xf32>
    %cst_121 = arith.constant dense<0.000000e+00> : vector<2x32xf32>
    %452 = tpu.matmul %450, %219, %cst_121 {dimension_numbers = #tpu.dot_dimension_numbers<[1], [0], [0], [1], [0, 0, 1, 1], [], []>} : vector<2x6xf32>, vector<6x32xf32>, vector<2x32xf32> -> vector<2x32xf32>
    %453 = arith.addf %451, %452 : vector<2x32xf32>
    %454 = vector.broadcast %221 : vector<1x32xf32> to vector<2x32xf32>
    %455 = arith.addf %453, %454 : vector<2x32xf32>
    %456 = arith.negf %455 : vector<2x32xf32>
    %457 = math.exp %456 : vector<2x32xf32>
    %cst_122 = arith.constant 1.000000e+00 : f32
    %458 = vector.broadcast %cst_122 : f32 to vector<2x32xf32>
    %459 = arith.addf %458, %457 : vector<2x32xf32>
    %460 = arith.divf %458, %459 : vector<2x32xf32>
    %461 = math.tanh %455 : vector<2x32xf32>
    %462 = vector.extract_strided_slice %460 {offsets = [0, 0], sizes = [2, 8], strides = [1, 1]} : vector<2x32xf32> to vector<2x8xf32>
    %463 = vector.extract_strided_slice %460 {offsets = [0, 8], sizes = [2, 8], strides = [1, 1]} : vector<2x32xf32> to vector<2x8xf32>
    %464 = vector.extract_strided_slice %461 {offsets = [0, 16], sizes = [2, 8], strides = [1, 1]} : vector<2x32xf32> to vector<2x8xf32>
    %465 = vector.extract_strided_slice %460 {offsets = [0, 24], sizes = [2, 8], strides = [1, 1]} : vector<2x32xf32> to vector<2x8xf32>
    %466 = arith.mulf %463, %417 : vector<2x8xf32>
    %467 = arith.mulf %462, %464 : vector<2x8xf32>
    %468 = arith.addf %466, %467 : vector<2x8xf32>
    %469 = math.tanh %468 : vector<2x8xf32>
    %470 = arith.mulf %465, %469 : vector<2x8xf32>
    %cst_123 = arith.constant dense<0.000000e+00> : vector<2x6xf32>
    %471 = tpu.matmul %470, %222, %cst_123 {dimension_numbers = #tpu.dot_dimension_numbers<[1], [0], [0], [1], [0, 0, 1, 1], [], []>} : vector<2x8xf32>, vector<8x6xf32>, vector<2x6xf32> -> vector<2x6xf32>
    %472 = vector.broadcast %223 : vector<1x6xf32> to vector<2x6xf32>
    %473 = arith.addf %471, %472 : vector<2x6xf32>
    %cst_124 = arith.constant dense<0xFF800000> : vector<2xf32>
    %474 = vector.multi_reduction <maximumf>, %473, %cst_124 [1] : vector<2x6xf32> to vector<2xf32>
    %475 = vector.shape_cast %474 : vector<2xf32> to vector<2x1xf32>
    %476 = vector.broadcast %475 : vector<2x1xf32> to vector<2x6xf32>
    %477 = arith.subf %473, %476 : vector<2x6xf32>
    %478 = math.exp %477 : vector<2x6xf32>
    %cst_125 = arith.constant dense<0.000000e+00> : vector<2xf32>
    %479 = vector.multi_reduction <add>, %478, %cst_125 [1] : vector<2x6xf32> to vector<2xf32>
    %480 = vector.shape_cast %479 : vector<2xf32> to vector<2x1xf32>
    %481 = math.log %480 : vector<2x1xf32>
    %482 = vector.broadcast %475 : vector<2x1xf32> to vector<2x6xf32>
    %483 = arith.subf %473, %482 : vector<2x6xf32>
    %484 = vector.broadcast %481 : vector<2x1xf32> to vector<2x6xf32>
    %485 = arith.subf %483, %484 : vector<2x6xf32>
    %c4_126 = arith.constant 4 : index
    %c0_127 = arith.constant 0 : index
    %c0_128 = arith.constant 0 : index
    %486 = vector.load %arg13[%c4_126, %c0_127, %c0_128] : memref<5x2x6xf32, #tpu.memory_space<vmem>>, vector<1x2x6xf32>
    %487 = vector.shape_cast %486 : vector<1x2x6xf32> to vector<2x6xf32>
    %488 = vector.shape_cast %485 : vector<2x6xf32> to vector<1x2x6xf32>
    tpu.vector_store %arg13[%c4_126, %c0_127, %c0_128], %488 {strides = array<i32>} : memref<5x2x6xf32, #tpu.memory_space<vmem>>, vector<1x2x6xf32>,
    return
  }
}

</mosaic_0001>

<bundles_post_ra>
// kernel: seq2seq_forward.1
= control target key start
LH: loop header
LB: loop body
LE: loop exit
PB: predicated region body
PF: predicated region fallthrough
CT: control target
= control target key end

     0   :  { %18 = vsyncpa [#allocation5], 0  ;;  %s3371_s0 = inlined_call_operand.vmem [shape: s32[5], index: 0, kind: input, shape index: {}]   ;;  %s3372_s1 = inlined_call_operand.vmem [shape: s32[12], index: 1, kind: input, shape index: {}]   ;;  %s3373_s2 = inlined_call_operand.vmem [shape: s32[10], index: 2, kind: input, shape index: {}]   ;;  %s3374_s3 = inlined_call_operand.vmem [shape: f32[7,10], index: 3, kind: input, shape index: {}]   ;;  %s3375_s4 = inlined_call_operand.vmem [shape: f32[10,32], index: 4, kind: input, shape index: {}]   ;;  %s3376_s5 = inlined_call_operand.vmem [shape: f32[8,32], index: 5, kind: input, shape index: {}]   ;;  %s3377_s6 = inlined_call_operand.vmem [shape: f32[1,32], index: 6, kind: input, shape index: {}]   ;;  %s3378_s7 = inlined_call_operand.hbm [shape: f32[6,10], index: 7, kind: input, shape index: {}]   ;;  %s3379_s8 = inlined_call_operand.vmem [shape: f32[10,32], index: 8, kind: input, shape index: {}]   ;;  %s3380_s9 = inlined_call_operand.vmem [shape: f32[8,32], index: 9, kind: input, shape index: {}]   ;;  %s3381_s10 = inlined_call_operand.hbm [shape: f32[1,32], index: 10, kind: input, shape index: {}]   ;;  %s3382_s11 = inlined_call_operand.hbm [shape: f32[8,6], index: 11, kind: input, shape index: {}]   ;;  %s3383_s12 = inlined_call_operand.hbm [shape: f32[1,6], index: 12, kind: input, shape index: {}]   ;;  %s3384_s13 = inlined_call_operand.hbm [shape: f32[5,2,6], index: 13, kind: output, shape index: {}]  }
   0x1   :  { %19 = vsyncpa [#allocation7], 0 }
   0x2   :  { %20 = vsyncpa [#allocation3], 0 }
   0x3   :  { %21 = vsyncpa [#allocation11], 0 }
   0x4   :  { %22 = vsyncpa [#allocation14], 0  ;;  %s40_s27 = sshll.u32 %s3372_s1, 4  ;;  %s41_s27 = int_to_ptr.vmem [resolvable:$true] %s40_s27 }
   0x5   :  { %23 = vsyncpa [#allocation4], 0  ;;  %s2676_s28 = scalar_lea.vmem %s41_s27, 16  ;;  %p2681_p1 = scmp.lt.s32.totalorder %s41_s27, %s41_s27 }
   0x6   :  { %p2677_p0 = scmp.ne.s32.totalorder %s41_s27, %s2676_s28  ;;  %p2682_p2 = scmp.lt.s32.totalorder %s2676_s28, %s2676_s28 }
   0x8   :  { %p2683_p3 = por %p2682_p2, %p2681_p1 }
   0xa   :  { %p2684_p4 = pnand %p2683_p3, %p2677_p0 }
   0xc   :  { %2687 = shalt.err (!%p2684_p4)
}
   0xd   :  { %s2834_s29 = smov [#allocation6]   ;;  %s2835_s30 = smov [#allocation10]  }
   0xe   :  { %43 = dma.vmem_to_smem %s41_s27, 16, %s2834_s29, [#allocation7]  }
   0xf   :  { %s82_s14 = sshll.u32 %s2835_s30, 4  ;;  %s30_s17 = sshll.u32 %s3371_s0, 4  ;;  %s83_s14 = int_to_ptr.vmem [resolvable:$true] %s82_s14  ;;  %s31_s17 = int_to_ptr.vmem [resolvable:$true] %s30_s17 }
  0x10   :  { %s2688_s19 = scalar_lea.hbm %s3381_s10, 16 }
  0x11   :  { %p2689_p5 = scmp.ne.s32.totalorder %s3381_s10, %s2688_s19  ;;  %p2692_p6 = scmp.lt.u32.totalorder %s2688_s19, %s3381_s10 }
  0x13   :  { %p2694_p7 = pnand %p2692_p6, %p2689_p5 }
  0x15   :  { %2697 = shalt.err (!%p2694_p7)
}
  0x16   :  { %s2698_s24 = scalar_lea.vmem %s83_s14, 16  ;;  %s2702_s25 = scalar_lea.vmem %s83_s14, 32 }
  0x17   :  { %p2699_p8 = scmp.ne.s32.totalorder %s83_s14, %s2698_s24  ;;  %p2703_p9 = scmp.lt.s32.totalorder %s83_s14, %s83_s14 }
  0x18   :  { %p2704_p10 = scmp.lt.s32.totalorder %s2702_s25, %s2698_s24 }
  0x1a   :  { %p2705_p11 = por %p2704_p10, %p2703_p9 }
  0x1c   :  { %p2706_p12 = pnand %p2705_p11, %p2699_p8 }
  0x1e   :  { %2709 = shalt.err (!%p2706_p12)
}
  0x1f   :  { %85 = dma.hbm_to_vmem [thread:$0]  %s3381_s10, 16, %s83_s14, [#allocation11]  }
  0x20   :  { %s50_s29 = sshll.u32 %s3373_s2, 4  ;;  %s2710_s30 = scalar_lea.vmem %s31_s17, 16  ;;  %s51_s29 = int_to_ptr.vmem [resolvable:$true] %s50_s29 }
  0x21   :  { %p2711_p13 = scmp.ne.s32.totalorder %s31_s17, %s2710_s30  ;;  %p2715_p0 = scmp.lt.s32.totalorder %s31_s17, %s31_s17 }
  0x22   :  { %p2716_p1 = scmp.lt.s32.totalorder %s2710_s30, %s2710_s30 }
  0x24   :  { %p2717_p2 = por %p2716_p1, %p2715_p0 }
  0x26   :  { %p2718_p3 = pnand %p2717_p2, %p2711_p13 }
  0x28   :  { %2721 = shalt.err (!%p2718_p3)
}
  0x29   :  { %s2836_s15 = smov [#allocation2]   ;;  %s2722_s16 = scalar_lea.vmem %s51_s29, 16 }
  0x2a   :  { %33 = dma.vmem_to_smem %s31_s17, 16, %s2836_s15, [#allocation5]  }
  0x2b   :  { %p2723_p4 = scmp.ne.s32.totalorder %s51_s29, %s2722_s16  ;;  %p2727_p5 = scmp.lt.s32.totalorder %s51_s29, %s51_s29 }
  0x2c   :  { %p2728_p6 = scmp.lt.s32.totalorder %s2722_s16, %s2722_s16 }
  0x2e   :  { %p2729_p7 = por %p2728_p6, %p2727_p5 }
  0x30   :  { %p2730_p8 = pnand %p2729_p7, %p2723_p4 }
  0x32   :  { %2733 = shalt.err (!%p2730_p8)
}
  0x33   :  { %s2837_s10 = smov [#allocation8]   ;;  %s2838_s2 = smov [#allocation9]  }
  0x34   :  { %53 = dma.vmem_to_smem %s51_s29, 16, %s2837_s10, [#allocation7]  }
  0x35   :  { %s68_s14 = sshll.u32 %s2838_s2, 4  ;;  %s2839_s1 = smov [#allocation12]   ;;  %s69_s14 = int_to_ptr.vmem [resolvable:$true] %s68_s14 }
  0x36   :  { %s92_s18 = sshll.u32 %s2839_s1, 4  ;;  %s2734_s17 = scalar_lea.hbm %s3378_s7, 128  ;;  %s93_s18 = int_to_ptr.vmem [resolvable:$true] %s92_s18 }
  0x37   :  { %p2735_p9 = scmp.ne.s32.totalorder %s3378_s7, %s2734_s17  ;;  %p2738_p10 = scmp.lt.u32.totalorder %s2734_s17, %s3378_s7 }
  0x39   :  { %p2740_p11 = pnand %p2738_p10, %p2735_p9 }
  0x3b   :  { %2743 = shalt.err (!%p2740_p11)
}
  0x3c   :  { %s2744_s25 = scalar_lea.vmem %s69_s14, 128  ;;  %p2749_p13 = scmp.lt.s32.totalorder %s69_s14, %s69_s14 }
  0x3d   :  { %p2745_p12 = scmp.ne.s32.totalorder %s69_s14, %s2744_s25  ;;  %p2750_p0 = scmp.lt.s32.totalorder %s2744_s25, %s2744_s25 }
  0x3f   :  { %p2751_p1 = por %p2750_p0, %p2749_p13 }
  0x41   :  { %p2752_p2 = pnand %p2751_p1, %p2745_p12 }
  0x43   :  { %2755 = shalt.err (!%p2752_p2)
}
  0x44   :  { %71 = dma.hbm_to_vmem [thread:$0]  %s3378_s7, 128, %s69_s14, [#allocation3]  }
  0x45   :  { %s2756_s29 = scalar_lea.hbm %s3382_s11, 128 }
  0x46   :  { %p2757_p3 = scmp.ne.s32.totalorder %s3382_s11, %s2756_s29  ;;  %p2760_p4 = scmp.lt.u32.totalorder %s2756_s29, %s3382_s11 }
  0x48   :  { %p2762_p5 = pnand %p2760_p4, %p2757_p3 }
  0x4a   :  { %2765 = shalt.err (!%p2762_p5)
}
  0x4b   :  { %s2766_s2 = scalar_lea.vmem %s93_s18, 128  ;;  %p2771_p7 = scmp.lt.s32.totalorder %s93_s18, %s93_s18 }
  0x4c   :  { %p2767_p6 = scmp.ne.s32.totalorder %s93_s18, %s2766_s2  ;;  %p2772_p8 = scmp.lt.s32.totalorder %s2766_s2, %s2766_s2 }
  0x4e   :  { %p2773_p9 = por %p2772_p8, %p2771_p7 }
  0x50   :  { %p2774_p10 = pnand %p2773_p9, %p2767_p6 }
  0x52   :  { %2777 = shalt.err (!%p2774_p10)
}
  0x53   :  { %95 = dma.hbm_to_vmem [thread:$0]  %s3382_s11, 128, %s93_s18, [#allocation11]  }
  0x54   :  { %s2840_s1 = smov [#allocation13]   ;;  %s2778_s21 = scalar_lea.hbm %s3383_s12, 16 }
  0x55   :  { %s102_s19 = sshll.u32 %s2840_s1, 4  ;;  %p2779_p11 = scmp.ne.s32.totalorder %s3383_s12, %s2778_s21  ;;  %s103_s19 = int_to_ptr.vmem [resolvable:$true] %s102_s19 }
  0x56   :  { %p2782_p12 = scmp.lt.u32.totalorder %s2778_s21, %s3383_s12 }
  0x58   :  { %p2784_p13 = pnand %p2782_p12, %p2779_p11 }
  0x5a   :  { %2787 = shalt.err (!%p2784_p13)
}
  0x5b   :  { %s2788_s0 = scalar_lea.vmem %s103_s19, 16  ;;  %s2792_s11 = scalar_lea.vmem %s103_s19, 32 }
  0x5c   :  { %p2789_p0 = scmp.ne.s32.totalorder %s103_s19, %s2788_s0  ;;  %p2793_p1 = scmp.lt.s32.totalorder %s103_s19, %s103_s19 }
  0x5d   :  { %p2794_p2 = scmp.lt.s32.totalorder %s2792_s11, %s2788_s0 }
  0x5f   :  { %p2795_p3 = por %p2794_p2, %p2793_p1 }
  0x61   :  { %p2796_p4 = pnand %p2795_p3, %p2789_p0 }
  0x63   :  { %2799 = shalt.err (!%p2796_p4)
}
  0x64   :  { %105 = dma.hbm_to_vmem [thread:$0]  %s3383_s12, 16, %s103_s19, [#allocation14]  }
  0x65   :  { %2822 = dma.done.wait [#allocation5], 16  }
  0x66   :  { %2823 = vsyncadd [#allocation5], 4294967280 }
  0x67   :  { %2824 = dma.done.wait [#allocation7], 32  }
  0x68   :  { %2825 = vsyncadd [#allocation7], 4294967264 }
  0x69   :  { %2826 = dma.done.wait [#allocation3], 128  }
  0x6a   :  { %2827 = vsyncadd [#allocation3], 4294967168 }
  0x6b   :  { %2828 = dma.done.wait [#allocation11], 144  }
  0x6c   :  { %2829 = vsyncadd [#allocation11], 4294967152 }
  0x6d   :  { %2830 = dma.done.wait [#allocation14], 16  }
  0x6e   :  { %2831 = vsyncadd [#allocation14], 4294967280 }
  0x6f   :  { %127 = sfence }
  0x70   :  { %v241_v0 = vld [vmem:[%s3374_s3] sm:$0x7f]  ;;  %vm249_vm0 = vcmask 1046528   ;;  %v128_v1 = vlaneseq  ;;  %s135_s29 = sld [smem:[#allocation6]]  ;;  %s2331_s12 = sld [smem:[#allocation6 + $0x1]]  ;;  %v2841_v4 = vmov 0.0  }
  0x71   :  { %2443 = vmatprep.subr.msk.mxu0 %vm249_vm0, %v241_v0  ;;  %s2332_s30 = sld [smem:[#allocation6 + $0x2]]  ;;  %s2984_s15 = sld [smem:[#allocation6 + $0x3]]  ;;  %vm242_vm7 = vcmask 56320   ;;  %v328_v26 = vld [vmem:[%s3375_s4] sm:$0xff]  ;;  %v329_v27 = vld [vmem:[%s3375_s4 + $0x8] sm:$0x3] }
  0x72   :  { %2444 = vmatpush3.msk.msra.mxu0 %vm249_vm0, %v241_v0  ;;  %v2982_v2 = vshrl.u32 %v128_v1, 7  ;;  %s2986_s16 = sld [smem:[#allocation6 + $0x4]]  ;;  %v2988_v3 = vand.u32 127, %v128_v1  ;;  %s2990_s10 = sld [smem:[#allocation6 + $0x5]]  ;;  %v2552_v31 = vpack.c.bf16 %v329_v27, %v328_v26  ;;  %v3085_v36 = vld [vmem:[%s3376_s5] sm:$0xff] }
  0x73   :  { %s2992_s2 = sld [smem:[#allocation6 + $0x6]]  ;;  %2455 = vmatprep.subr.mxu0 %v2841_v4  ;;  %s2995_s3 = sld [smem:[#allocation6 + $0x7]]  ;;  %v2345_v41 = vld [vmem:[%s3377_s6] ss:$0 sm:$0xff] }
  0x74   :  { %vm3386_vm1 = vcmp.eq.s32.totalorder %v2982_v2, 0  ;;  %vm3385_vm2 = vcmp.eq.s32.totalorder %v2982_v2, 1  ;;  %vm151_vm3 = vcmp.eq.s32.totalorder %v2982_v2, 2  ;;  %vm160_vm4 = vcmp.eq.s32.totalorder %v2982_v2, 3  ;;  %s3001_s7 = sld [smem:[#allocation6 + $0x8]]  ;;  %s3005_s14 = sld [smem:[#allocation6 + $0x9]] }
  0x75   :  { %vm169_vm5 = vcmp.eq.s32.totalorder %v2982_v2, 4  ;;  %vm178_vm6 = vcmp.eq.s32.totalorder %v2982_v2, 5  ;;  %s3007_s1 = sld [smem:[#allocation6 + $0xa]]  ;;  %v130_v8 = vadd.s32 8, %v2982_v2  ;;  %s3011_s19 = sld [smem:[#allocation6 + $0xb]] }
  0x76   :  { %v136_v5 = vstv %s135_s29  ;;  %v145_v6 = vstv %s2331_s12  ;;  %s2844_s25 = smov 112   ;;  %s2845_s6 = smov 8  }
  0x77   :  { %vm137_vm8 = vcmp.eq.s32.totalorder %v2988_v3, %v136_v5  ;;  %v154_v7 = vstv %s2332_s30  ;;  %vm146_vm10 = vcmp.eq.s32.totalorder %v2988_v3, %v145_v6  ;;  %v163_v9 = vstv %s2984_s15  ;;  %s2846_s0 = smov 16   ;;  %s2847_s11 = smov 104  }
  0x78   :  { %vm138_vm9 = vmand %vm3386_vm1, %vm137_vm8  ;;  %vm155_vm11 = vcmp.eq.s32.totalorder %v2988_v3, %v154_v7  ;;  %v172_v10 = vstv %s2986_s16  ;;  %vm164_vm13 = vcmp.eq.s32.totalorder %v2988_v3, %v163_v9  ;;  %v181_v12 = vstv %s2990_s10  ;;  %s1136_s12 = sld [smem:[#allocation8]]  ;;  %s2362_s30 = sld [smem:[#allocation8 + $0x1]] }
  0x79   :  { %v140_v11 = vsel %vm138_vm9, 1.0, %v2841_v4  ;;  %vm147_vm12 = vmand %vm3385_vm2, %vm146_vm10  ;;  %vm173_vm14 = vcmp.eq.s32.totalorder %v2988_v3, %v172_v10  ;;  %vm182_vm0 = vcmp.eq.s32.totalorder %v2988_v3, %v181_v12  ;;  %v190_v14 = vstv %s2992_s2  ;;  %s2377_s15 = sld [smem:[#allocation2 + $0x1]]  ;;  %s2364_s16 = sld [smem:[#allocation8 + $0x3]] }
  0x7a   :  { %v149_v13 = vsel %vm147_vm12, 1.0, %v140_v11  ;;  %vm156_vm15 = vmand %vm151_vm3, %vm155_vm11  ;;  %v199_v15 = vstv %s2995_s3  ;;  %vm187_vm9 = vcmp.eq.s32.totalorder %v2982_v2, 6  ;;  %vm191_vm10 = vcmp.eq.s32.totalorder %v2988_v3, %v190_v14  ;;  %s2365_s2 = sld [smem:[#allocation8 + $0x4]]  ;;  %s2384_s3 = sld [smem:[#allocation2 + $0x2]] }
  0x7b   :  { %v158_v16 = vsel %vm156_vm15, 1.0, %v149_v13  ;;  %vm165_vm8 = vmand %vm160_vm4, %vm164_vm13  ;;  %vm196_vm2 = vcmp.eq.s32.totalorder %v2982_v2, 7  ;;  %vm3038_vm11 = vcmp.eq.s32.totalorder %v2988_v3, %v199_v15  ;;  %v208_v19 = vstv %s3001_s7  ;;  %s2366_s7 = sld [smem:[#allocation8 + $0x5]]  ;;  %s2368_s20 = sld [smem:[#allocation8 + $0x7]] }
  0x7c   :  { %v167_v17 = vsel %vm165_vm8, 1.0, %v158_v16  ;;  %vm174_vm3 = vmand %vm169_vm5, %vm173_vm14  ;;  %v217_v20 = vstv %s3005_s14  ;;  %vm206_vm12 = vcmp.eq.s32.totalorder %v130_v8, 8  ;;  %vm209_vm13 = vcmp.eq.s32.totalorder %v2988_v3, %v208_v19  ;;  %s2849_s21 = smov [#allocation15]  }
  0x7d   :  { %v176_v21 = vsel %vm174_vm3, 1.0, %v167_v17  ;;  %vm183_vm4 = vmand %vm178_vm6, %vm182_vm0  ;;  %vm215_vm15 = vcmp.eq.s32.totalorder %v130_v8, 9  ;;  %vm3048_vm1 = vcmp.eq.s32.totalorder %v2988_v3, %v217_v20  ;;  %v226_v24 = vstv %s3007_s1  ;;  %s2367_s1 = sld [smem:[#allocation8 + $0x6]]  ;;  %s2315_s22 = sshll.u32 %s2849_s21, 4  ;;  %s2316_s22 = int_to_ptr.vmem [resolvable:$true] %s2315_s22 }
  0x7e   :  { %v185_v22 = vsel %vm183_vm4, 1.0, %v176_v21  ;;  %vm192_vm8 = vmand %vm187_vm9, %vm191_vm10  ;;  %v235_v25 = vstv %s3011_s19  ;;  %vm224_vm6 = vcmp.eq.s32.totalorder %v130_v8, 10  ;;  %vm227_vm14 = vcmp.eq.s32.totalorder %v2988_v3, %v226_v24  ;;  %s2391_s19 = sld [smem:[#allocation2 + $0x3]]  ;;  %s2800_s4 = scalar_lea.vmem %s2316_s22, 160 }
  0x7f   :  { %v194_v28 = vsel %vm192_vm8, 1.0, %v185_v22  ;;  %vm201_vm5 = vmand %vm196_vm2, %vm3038_vm11  ;;  %vm233_vm9 = vcmp.eq.s32.totalorder %v130_v8, 11  ;;  %vm236_vm10 = vcmp.eq.s32.totalorder %v2988_v3, %v235_v25  ;;  %vm344_vm4 = vcmask 1041408   ;;  %p1482_p5 = scmp.gt.s32.totalorder %s2377_s15, 0  ;;  %p2801_p8 = scmp.ne.s32.totalorder %s2316_s22, %s2800_s4 }
  0x80   :  { %v203_v29 = vsel %vm201_vm5, 1.0, %v194_v28  ;;  %vm211_vm0 = vmand %vm206_vm12, %vm209_vm13  ;;  %vm2842_vm8 = vmmov 1   ;;  %vm424_vm13 = vcmask 64512   ;;  %vm3393_vm5 = vcmp.eq.s32.totalorder %v2982_v2, 0  ;;  %p1765_p6 = scmp.gt.s32.totalorder %s2384_s3, 0  ;;  %p2805_p9 = scmp.lt.s32.totalorder %s2316_s22, %s2316_s22 }
  0x81   :  { %2445 = vmatprep.mubr.msk.f32.mxu0 %vm242_vm7, %v203_v29  ;;  %v213_v30 = vsel %vm211_vm0, 1.0, %v2841_v4  ;;  %vm220_vm3 = vmand %vm215_vm15, %vm3048_vm1  ;;  %vm2843_vm1 = vmmov 0   ;;  %vm3394_vm0 = vcmp.eq.s32.totalorder %v2982_v2, 1  ;;  %s1483_s10 = scalar_select %p1482_p5, 1, 0 }
  0x82   :  { %v222_v32 = vsel %vm220_vm3, 1.0, %v213_v30  ;;  %vm229_vm2 = vmand %vm224_vm6, %vm227_vm14  ;;  %vm1178_vm3 = vcmask 48128   ;;  %s1766_s14 = scalar_select %p1765_p6, 1, 0 }
  0x83   :  { %v231_v33 = vsel %vm229_vm2, 1.0, %v222_v32  ;;  %vm238_vm11 = vmand %vm233_vm9, %vm236_vm10  ;;  %vm1182_vm10 = vcmask 1045504   ;;  %p2806_p10 = scmp.lt.s32.totalorder %s2800_s4, %s2800_s4 }
  0x84   :  { %v240_v34 = vsel %vm238_vm11, 1.0, %v231_v33  ;;  %vm3072_vm12 = vmpackc.low %vm344_vm4, %vm2842_vm8  ;;  %vm1176_vm4 = vcmask 41984   ;;  %p2048_p7 = scmp.gt.s32.totalorder %s2391_s19, 0 }
  0x85   :  { %2446 = vmatmul.mubr.msk.f32.vlgmr.msra.gmra.mrb[0].mxu0 %vm242_vm7, %v240_v34  ;;  %2554 = vmatprep.subr.msk.bf16.mxu1 %vm3072_vm12, %v2552_v31  ;;  %vm337_vm7 = vcmask 80896   ;;  %1177 = vst.msk [vmem:[#allocation15] sm:$0x3] %vm1176_vm4, %v2841_v4  ;;  %p2807_p11 = por %p2806_p10, %p2805_p9 }
  0x86   :  { %2557 = vmatpush3.bf16.msk.msra.mxu1 %vm3072_vm12, %v2552_v31  ;;  %2456 = vmatpush3.msra.mxu0 %v3085_v36  ;;  %s2049_s17 = scalar_select %p2048_p7, 1, 0 }
  0x87   :  { %2460 = vmatprep.subr.mxu1 %v2841_v4  ;;  %2457 = vmatprep.mubr.msk.f32.mxu0 %vm2843_vm1, %v2841_v4  ;;  %p2808_p12 = pnand %p2807_p11, %p2801_p8 }
  0x88   :  { %2465 = vmatprep.subr.mxu0 %v2841_v4 }
  0x89   :  { %2458 = vmatmul.mubr.f32.vlgmr.msra.gmra.mrb[2].mxu0 %v2841_v4 }
  0x8a   :  { %2466 = vmatpush3.msra.mxu0 %v3085_v36  ;;  %2467 = vmatprep.mubr.msk.f32.mxu0 %vm2843_vm1, %v2841_v4 }
  0x8b   :  { %2475 = vmatprep.subr.mxu0 %v2841_v4 }
 0x158   :  { %v2447_v37 = vpop.f32.mrb[0].mxu0 }
 0x159   :  { %v319_v38 = vpop.f32.mrb[1].mxu0 }
 0x15a   :  { %2452 = vmatprep.mubr.msk.f32.mxu1 %vm337_vm7, %v319_v38 }
 0x15b   :  { %2453 = vmatmul.mubr.msk.f32.vlgmr.msra.gmra.mrb[0].mxu1 %vm337_vm7, %v2447_v37 }
 0x15c   :  { %2461 = vmatpush3.msra.mxu1 %v3085_v36  ;;  %2462 = vmatprep.mubr.msk.f32.mxu1 %vm2843_vm1, %v2841_v4  ;;  %v494_v39 = vpop.f32.mrb[2].mxu0 }
 0x15d   :  { %2470 = vmatprep.subr.mxu1 %v2841_v4  ;;  %v2459_v40 = vpop.f32.mrb[3].mxu0 }
 0x22e   :  { %v2454_v42 = vpop.f32.mrb[0].mxu1 }
 0x22f   :  { %v3105_v43 = vadd.f32 %v2454_v42, %v2345_v41  ;;  %v414_v44 = vpop.f32.mrb[1].mxu1 }
 0x230   :  { %v3107_v45 = vadd.f32 %v2345_v41, %v414_v44 }
 0x232   :  { %v498_v46 = vadd.f32 %v494_v39, %v3107_v45 }
 0x234   :  { %2580 = vtanh.f32 %v498_v46  ;;  %v2349_v48 = vmul.f32 -1.442695, %v498_v46 }
 0x236   :  { %2582 = vpow2.f32 %v2349_v48 }
 0x23e   :  { %v2581_v47 = vpop.eup %2580 }
 0x23f   :  { %508 = vrot.lane.b32.xlu0 %v2581_v47, %s2844_s25 }
 0x240   :  { %v2583_v49 = vpop.eup %2582 }
 0x241   :  { %v502_v50 = vadd.f32 1.0, %v2583_v49 }
 0x243   :  { %2584 = vrcp.f32 %v502_v50 }
 0x24d   :  { %v2585_v51 = vpop.eup %2584 }
 0x24e   :  { %v506_v54 = vmul.f32 0.0, %v2585_v51 }
 0x2b1   :  { %v509_v52 = vpop.permute.xlu0 %508 }
 0x2b2   :  { %v511_v53 = vmul.f32 %v2585_v51, %v509_v52 }
 0x2b4   :  { %513 = vrot.lane.b32.xlu0 %v511_v53, %s2845_s6 }
 0x326   :  { %v514_v55 = vpop.permute.xlu0 %513 }
 0x327   :  { %v516_v56 = vadd.f32 %v514_v55, %v506_v54 }
 0x329   :  { %2586 = vtanh.f32 %v516_v56  ;;  %v610_v11 = vrot.slane %v516_v56, 6 }
 0x333   :  { %v2587_v57 = vpop.eup %2586 }
 0x334   :  { %519 = vrot.lane.b32.xlu1 %v2587_v57, %s2846_s0 }
 0x3a6   :  { %v520_v58 = vpop.permute.xlu1 %519 }
 0x3a7   :  { %v522_v59 = vmul.f32 %v2585_v51, %v520_v58 }
 0x3a9   :  { %524 = vrot.lane.b32.xlu1 %v522_v59, %s2847_s11 }
 0x41b   :  { %v525_v60 = vpop.permute.xlu1 %524 }
 0x41c   :  { %2463 = vmatmul.mubr.msk.f32.vlgmr.msra.gmra.mrb[2].mxu1 %vm424_vm13, %v525_v60 }
 0x41d   :  { %2471 = vmatpush3.msra.mxu1 %v3085_v36  ;;  %2472 = vmatprep.mubr.msk.f32.mxu1 %vm2843_vm1, %v2841_v4 }
 0x41e   :  { %2480 = vmatprep.subr.mxu1 %v2841_v4 }
 0x4ef   :  { %v594_v61 = vpop.f32.mrb[2].mxu1 }
 0x4f0   :  { %v599_v62 = vrot.slane %v594_v61, 6  ;;  %v2464_v63 = vpop.f32.mrb[3].mxu1 }
 0x4f2   :  { %v601_v0 = vadd.f32 %v599_v62, %v3107_v45 }
 0x4f4   :  { %2588 = vtanh.f32 %v601_v0  ;;  %v2351_v5 = vmul.f32 -1.442695, %v601_v0 }
 0x4f6   :  { %2590 = vpow2.f32 %v2351_v5 }
 0x4fe   :  { %v2589_v1 = vpop.eup %2588 }
 0x4ff   :  { %614 = vrot.lane.b32.xlu0 %v2589_v1, %s2844_s25 }
 0x500   :  { %v2591_v6 = vpop.eup %2590 }
 0x501   :  { %v605_v7 = vadd.f32 1.0, %v2591_v6 }
 0x503   :  { %2592 = vrcp.f32 %v605_v7 }
 0x50d   :  { %v2593_v8 = vpop.eup %2592 }
 0x50e   :  { %v612_v12 = vmul.f32 %v2593_v8, %v610_v11 }
 0x571   :  { %v615_v9 = vpop.permute.xlu0 %614 }
 0x572   :  { %v617_v10 = vmul.f32 %v2593_v8, %v615_v9 }
 0x574   :  { %619 = vrot.lane.b32.xlu1 %v617_v10, %s2845_s6 }
 0x5e6   :  { %v620_v13 = vpop.permute.xlu1 %619 }
 0x5e7   :  { %v622_v14 = vadd.f32 %v620_v13, %v612_v12 }
 0x5e9   :  { %2594 = vtanh.f32 %v622_v14  ;;  %v717_v31 = vrot.slane %v622_v14, 6 }
 0x5f3   :  { %v2595_v15 = vpop.eup %2594 }
 0x5f4   :  { %625 = vrot.lane.b32.xlu0 %v2595_v15, %s2846_s0 }
 0x666   :  { %v626_v16 = vpop.permute.xlu0 %625 }
 0x667   :  { %v628_v17 = vmul.f32 %v2593_v8, %v626_v16 }
 0x669   :  { %v630_v18 = vrot.slane %v628_v17, 2 }
 0x66b   :  { %631 = vrot.lane.b32.xlu1 %v630_v18, %s2847_s11 }
 0x6dd   :  { %v632_v19 = vpop.permute.xlu1 %631 }
 0x6de   :  { %2468 = vmatmul.mubr.msk.f32.vlgmr.msra.gmra.mrb[4].mxu0 %vm424_vm13, %v632_v19 }
 0x6df   :  { %2476 = vmatpush3.msra.mxu0 %v3085_v36  ;;  %2477 = vmatprep.mubr.msk.f32.mxu0 %vm2843_vm1, %v2841_v4 }
 0x7b1   :  { %v701_v20 = vpop.f32.mrb[4].mxu0 }
 0x7b2   :  { %v706_v21 = vrot.slane %v701_v20, 4  ;;  %v2469_v22 = vpop.f32.mrb[5].mxu0 }
 0x7b4   :  { %v708_v23 = vadd.f32 %v706_v21, %v3107_v45 }
 0x7b6   :  { %2596 = vtanh.f32 %v708_v23  ;;  %v2353_v25 = vmul.f32 -1.442695, %v708_v23 }
 0x7b8   :  { %2598 = vpow2.f32 %v2353_v25 }
 0x7c0   :  { %v2597_v24 = vpop.eup %2596 }
 0x7c1   :  { %721 = vrot.lane.b32.xlu0 %v2597_v24, %s2844_s25 }
 0x7c2   :  { %v2599_v26 = vpop.eup %2598 }
 0x7c3   :  { %v712_v27 = vadd.f32 1.0, %v2599_v26 }
 0x7c5   :  { %2600 = vrcp.f32 %v712_v27 }
 0x7cf   :  { %v2601_v28 = vpop.eup %2600 }
 0x7d0   :  { %v719_v32 = vmul.f32 %v2601_v28, %v717_v31  ;;  %v2848_v31 = vmov 0.0|0.0  }
 0x7d1   :  { %2558 = vmatprep.subr.bf16.mxu0 %v2848_v31 }
 0x833   :  { %v722_v29 = vpop.permute.xlu0 %721 }
 0x834   :  { %v724_v30 = vmul.f32 %v2601_v28, %v722_v29 }
 0x836   :  { %726 = vrot.lane.b32.xlu1 %v724_v30, %s2845_s6  ;;  %v1054_v30 = vld [vmem:[%s3379_s8] sm:$0xff] }
 0x8a8   :  { %v727_v33 = vpop.permute.xlu1 %726 }
 0x8a9   :  { %v729_v34 = vadd.f32 %v727_v33, %v719_v32  ;;  %v1053_v33 = vld [vmem:[#allocation9] sm:$0x3f] }
 0x8ab   :  { %2602 = vtanh.f32 %v729_v34  ;;  %v824_v54 = vrot.slane %v729_v34, 6 }
 0x8b5   :  { %v2603_v37 = vpop.eup %2602 }
 0x8b6   :  { %732 = vrot.lane.b32.xlu0 %v2603_v37, %s2846_s0 }
 0x928   :  { %v733_v38 = vpop.permute.xlu0 %732 }
 0x929   :  { %v735_v39 = vmul.f32 %v2601_v28, %v733_v38 }
 0x92b   :  { %v737_v40 = vrot.slane %v735_v39, 4 }
 0x92d   :  { %738 = vrot.lane.b32.xlu1 %v737_v40, %s2847_s11  ;;  %v3172_v40 = vld [vmem:[%s3380_s9] sm:$0xff]  ;;  %s2363_s9 = sld [smem:[#allocation8 + $0x2]] }
 0x99f   :  { %v739_v41 = vpop.permute.xlu1 %738 }
 0x9a0   :  { %2473 = vmatmul.mubr.msk.f32.vlgmr.msra.gmra.mrb[4].mxu1 %vm424_vm13, %v739_v41  ;;  %v1137_v41 = vstv %s1136_s12 }
 0x9a1   :  { %2481 = vmatpush3.msra.mxu1 %v3085_v36  ;;  %2482 = vmatprep.mubr.msk.f32.mxu1 %vm2843_vm1, %v2841_v4  ;;  %vm1138_vm15 = vcmp.eq.s32.totalorder %v2988_v3, %v1137_v41 }
 0x9a2   :  { %2492 = vmatprep.subr.mxu1 %v2841_v4  ;;  %vm1139_vm6 = vmand %vm3393_vm5, %vm1138_vm15 }
 0xa73   :  { %v808_v42 = vpop.f32.mrb[4].mxu1 }
 0xa74   :  { %v813_v44 = vrot.slane %v808_v42, 2  ;;  %v2474_v46 = vpop.f32.mrb[5].mxu1  ;;  %v1142_v42 = vstv %s2362_s30 }
 0xa75   :  { %vm1143_vm14 = vcmp.eq.s32.totalorder %v2988_v3, %v1142_v42 }
 0xa76   :  { %v815_v47 = vadd.f32 %v813_v44, %v3107_v45  ;;  %v1140_v44 = vsel %vm1139_vm6, 1.0, %v2841_v4  ;;  %vm1144_vm9 = vmand %vm3394_vm0, %vm1143_vm14 }
 0xa77   :  { %v1145_v46 = vsel %vm1144_vm9, 1.0, %v1140_v44 }
 0xa78   :  { %2604 = vtanh.f32 %v815_v47  ;;  %v2355_v49 = vmul.f32 -1.442695, %v815_v47 }
 0xa7a   :  { %2606 = vpow2.f32 %v2355_v49 }
 0xa82   :  { %v2605_v48 = vpop.eup %2604 }
 0xa83   :  { %828 = vrot.lane.b32.xlu0 %v2605_v48, %s2844_s25 }
 0xa84   :  { %v2607_v50 = vpop.eup %2606 }
 0xa85   :  { %v819_v51 = vadd.f32 1.0, %v2607_v50 }
 0xa87   :  { %2608 = vrcp.f32 %v819_v51 }
 0xa91   :  { %v2609_v36 = vpop.eup %2608 }
 0xa92   :  { %v826_v55 = vmul.f32 %v2609_v36, %v824_v54  ;;  %v3199_v54 = vld [vmem:[#allocation10] ss:$0 sm:$0xff] }
 0xaf5   :  { %v829_v52 = vpop.permute.xlu0 %828 }
 0xaf6   :  { %v831_v53 = vmul.f32 %v2609_v36, %v829_v52 }
 0xaf8   :  { %833 = vrot.lane.b32.xlu1 %v831_v53, %s2845_s6 }
 0xb6a   :  { %v834_v56 = vpop.permute.xlu1 %833 }
 0xb6b   :  { %v836_v57 = vadd.f32 %v834_v56, %v826_v55 }
 0xb6d   :  { %2610 = vtanh.f32 %v836_v57  ;;  %v928_v11 = vrot.slane %v836_v57, 6 }
 0xb77   :  { %v2611_v45 = vpop.eup %2610 }
 0xb78   :  { %839 = vrot.lane.b32.xlu0 %v2611_v45, %s2846_s0 }
 0xbea   :  { %v840_v58 = vpop.permute.xlu0 %839 }
 0xbeb   :  { %v842_v59 = vmul.f32 %v2609_v36, %v840_v58 }
 0xbed   :  { %v844_v60 = vrot.slane %v842_v59, 6 }
 0xbef   :  { %845 = vrot.lane.b32.xlu1 %v844_v60, %s2847_s11 }
 0xc61   :  { %v846_v61 = vpop.permute.xlu1 %845 }
 0xc62   :  { %2478 = vmatmul.mubr.msk.f32.vlgmr.msra.gmra.mrb[6].mxu0 %vm424_vm13, %v846_v61 }
 0xc63   :  { %2489 = vmatprep.mubr.msk.f32.mxu0 %vm2843_vm1, %v2841_v4 }
 0xd35   :  { %v915_v62 = vpop.f32.mrb[6].mxu0 }
 0xd36   :  { %v919_v63 = vadd.f32 %v915_v62, %v3105_v43  ;;  %v2479_v0 = vpop.f32.mrb[7].mxu0 }
 0xd38   :  { %2612 = vtanh.f32 %v919_v63  ;;  %v2357_v5 = vmul.f32 -1.442695, %v919_v63 }
 0xd3a   :  { %2614 = vpow2.f32 %v2357_v5 }
 0xd42   :  { %v2613_v1 = vpop.eup %2612 }
 0xd43   :  { %932 = vrot.lane.b32.xlu0 %v2613_v1, %s2844_s25 }
 0xd44   :  { %v2615_v6 = vpop.eup %2614 }
 0xd45   :  { %v923_v7 = vadd.f32 1.0, %v2615_v6 }
 0xd47   :  { %2616 = vrcp.f32 %v923_v7 }
 0xd51   :  { %v2617_v8 = vpop.eup %2616 }
 0xd52   :  { %v930_v12 = vmul.f32 %v2617_v8, %v928_v11 }
 0xdb5   :  { %v933_v9 = vpop.permute.xlu0 %932 }
 0xdb6   :  { %v935_v10 = vmul.f32 %v2617_v8, %v933_v9 }
 0xdb8   :  { %937 = vrot.lane.b32.xlu1 %v935_v10, %s2845_s6 }
 0xe2a   :  { %v938_v13 = vpop.permute.xlu1 %937 }
 0xe2b   :  { %v940_v14 = vadd.f32 %v938_v13, %v930_v12  ;;  %v3226_v13 = vld [vmem:[#allocation13] ss:$0 sm:$0xff] }
 0xe2d   :  { %2618 = vtanh.f32 %v940_v14  ;;  %v1034_v34 = vrot.slane %v940_v14, 6 }
 0xe37   :  { %v2619_v15 = vpop.eup %2618 }
 0xe38   :  { %943 = vrot.lane.b32.xlu0 %v2619_v15, %s2846_s0 }
 0xeaa   :  { %v944_v16 = vpop.permute.xlu0 %943 }
 0xeab   :  { %v946_v17 = vmul.f32 %v2617_v8, %v944_v16  ;;  %v3207_v8 = vld [vmem:[#allocation12] sm:$0xff] }
 0xead   :  { %948 = vrot.lane.b32.xlu1 %v946_v17, %s2847_s11 }
 0xf1f   :  { %v949_v18 = vpop.permute.xlu1 %948 }
 0xf20   :  { %2483 = vmatmul.mubr.msk.f32.vlgmr.msra.gmra.mrb[6].mxu1 %vm424_vm13, %v949_v18 }
 0xf21   :  { %2494 = vmatprep.mubr.msk.f32.mxu1 %vm2843_vm1, %v2841_v4 }
 0xff3   :  { %v1018_v19 = vpop.f32.mrb[6].mxu1 }
 0xff4   :  { %v1023_v20 = vrot.slane %v1018_v19, 6  ;;  %v2484_v21 = vpop.f32.mrb[7].mxu1 }
 0xff6   :  { %v1025_v22 = vadd.f32 %v1023_v20, %v3105_v43  ;;  %v1055_v43 = vld [vmem:[%s3379_s8 + $0x8] sm:$0x3] }
 0xff7   :  { %v2559_v32 = vpack.c.bf16 %v1055_v43, %v1054_v30  ;;  %v1152_v30 = vstv %s2364_s16 }
 0xff8   :  { %2620 = vtanh.f32 %v1025_v22  ;;  %v2359_v24 = vmul.f32 -1.442695, %v1025_v22  ;;  %vm1153_vm15 = vcmp.eq.s32.totalorder %v2988_v3, %v1152_v30 }
 0xff9   :  { %2561 = vmatpush3.bf16.msk.msra.mxu0 %vm3072_vm12, %v2559_v32  ;;  %vm3395_vm12 = vmmov %vm3393_vm5 }
 0xffa   :  { %2622 = vpow2.f32 %v2359_v24  ;;  %2497 = vmatprep.subr.mxu0 %v2841_v4  ;;  %vm3396_vm5 = vmmov %vm3394_vm0 }
 0xffb   :  { %vm1154_vm6 = vmand %vm3396_vm5, %vm1153_vm15 }
 0xffc   :  { %2490 = vmatmul.mubr.msk.f32.vlgmr.msra.gmra.mrb[8].mxu0 %vm337_vm7, %v1053_v33 }
 0xffd   :  { %2499 = vmatprep.mubr.msk.f32.mxu0 %vm2843_vm1, %v2841_v4  ;;  %2498 = vmatpush3.msra.mxu0 %v3172_v40 }
 0xffe   :  { %2507 = vmatprep.subr.mxu0 %v2841_v4 }
0x1002   :  { %v2621_v23 = vpop.eup %2620 }
0x1003   :  { %1038 = vrot.lane.b32.xlu0 %v2621_v23, %s2844_s25 }
0x1004   :  { %v2623_v25 = vpop.eup %2622 }
0x1005   :  { %v1029_v26 = vadd.f32 1.0, %v2623_v25 }
0x1007   :  { %2624 = vrcp.f32 %v1029_v26 }
0x1011   :  { %v2625_v27 = vpop.eup %2624 }
0x1012   :  { %v1036_v37 = vmul.f32 %v2625_v27, %v1034_v34 }
0x1075   :  { %v1039_v28 = vpop.permute.xlu0 %1038 }
0x1076   :  { %v1041_v29 = vmul.f32 %v2625_v27, %v1039_v28 }
0x1078   :  { %1043 = vrot.lane.b32.xlu1 %v1041_v29, %s2845_s6  ;;  %v1147_v29 = vstv %s2363_s9 }
0x1079   :  { %vm1148_vm8 = vcmp.eq.s32.totalorder %v2988_v3, %v1147_v29 }
0x107a   :  { %vm1149_vm7 = vmand %vm3395_vm12, %vm1148_vm8 }
0x107b   :  { %v1150_v34 = vsel %vm1149_vm7, 1.0, %v2841_v4  ;;  %vm3398_vm7 = vmmov %vm3396_vm5 }
0x10cf   :  { %v3184_v47 = vpop.f32.mrb[8].mxu0 }
0x10d0   :  { %v2491_v48 = vpop.f32.mrb[9].mxu0  ;;  %2493 = vmatpush3.msk.msra.mxu1 %vm1182_vm10, %v3184_v47 }
0x10d1   :  { %2495 = vmatmul.mubr.msk.f32.vlgmr.msra.gmra.mrb[8].mxu1 %vm1178_vm3, %v1145_v46  ;;  %2502 = vmatprep.subr.mxu1 %v2841_v4 }
0x10d2   :  { %2504 = vmatprep.mubr.msk.f32.mxu1 %vm2843_vm1, %v2841_v4  ;;  %2503 = vmatpush3.msra.mxu1 %v3207_v8 }
0x10d3   :  { %2512 = vmatprep.subr.mxu1 %v2841_v4 }
0x10ea   :  { %v1044_v38 = vpop.permute.xlu1 %1043 }
0x10eb   :  { %v1046_v39 = vadd.f32 %v1044_v38, %v1036_v37  ;;  %v1484_v37 = vstv %s1483_s10 }
0x10ec   :  { %vm1485_vm14 = vcmp.eq.s32.totalorder %v1484_v37, 1 }
0x10ed   :  { %2626 = vtanh.f32 %v1046_v39  ;;  %v1347_v1 = vrot.slane %v1046_v39, 2  ;;  %v1155_v39 = vsel %vm1154_vm6, 1.0, %v1150_v34 }
0x10f7   :  { %v2627_v35 = vpop.eup %2626 }
0x10f8   :  { %1049 = vrot.lane.b32.xlu0 %v2627_v35, %s2846_s0 }
0x116a   :  { %v1050_v49 = vpop.permute.xlu0 %1049 }
0x116b   :  { %v1052_v50 = vmul.f32 %v2625_v27, %v1050_v49 }
0x116d   :  { %v1257_v51 = vrot.slane %v1052_v50, 2 }
0x116f   :  { %1258 = vrot.lane.b32.xlu1 %v1257_v51, %s2847_s11 }
0x11a4   :  { %v1252_v52 = vpop.f32.mrb[8].mxu1 }
0x11a5   :  { %v2496_v53 = vpop.f32.mrb[9].mxu1 }
0x11e1   :  { %v1259_v36 = vpop.permute.xlu1 %1258 }
0x11e2   :  { %2500 = vmatmul.mubr.msk.f32.vlgmr.msra.gmra.mrb[10].mxu0 %vm424_vm13, %v1259_v36 }
0x11e3   :  { %2508 = vmatpush3.msk.msra.mxu0 %vm1182_vm10, %v3184_v47  ;;  %2509 = vmatprep.mubr.msk.f32.mxu0 %vm2843_vm1, %v2841_v4 }
0x11e4   :  { %2517 = vmatprep.subr.mxu0 %v2841_v4 }
0x12b5   :  { %v1328_v55 = vpop.f32.mrb[10].mxu0 }
0x12b6   :  { %v1329_v56 = vadd.f32 %v1328_v55, %v1252_v52  ;;  %v2501_v57 = vpop.f32.mrb[11].mxu0 }
0x12b8   :  { %v1338_v45 = vadd.f32 %v3199_v54, %v1329_v56 }
0x12ba   :  { %2628 = vtanh.f32 %v1338_v45  ;;  %v2373_v59 = vmul.f32 -1.442695, %v1338_v45 }
0x12bc   :  { %2630 = vpow2.f32 %v2373_v59 }
0x12c4   :  { %v2629_v58 = vpop.eup %2628 }
0x12c5   :  { %1351 = vrot.lane.b32.xlu0 %v2629_v58, %s2844_s25 }
0x12c6   :  { %v2631_v60 = vpop.eup %2630 }
0x12c7   :  { %v1342_v61 = vadd.f32 1.0, %v2631_v60 }
0x12c9   :  { %2632 = vrcp.f32 %v1342_v61 }
0x12d3   :  { %v2633_v62 = vpop.eup %2632 }
0x12d4   :  { %v1349_v5 = vmul.f32 %v2633_v62, %v1347_v1 }
0x1337   :  { %v1352_v63 = vpop.permute.xlu0 %1351 }
0x1338   :  { %v1354_v0 = vmul.f32 %v2633_v62, %v1352_v63 }
0x133a   :  { %1356 = vrot.lane.b32.xlu1 %v1354_v0, %s2845_s6 }
0x13ac   :  { %v1357_v6 = vpop.permute.xlu1 %1356 }
0x13ad   :  { %v3204_v7 = vadd.f32 %v1357_v6, %v1349_v5 }
0x13af   :  { %2634 = vtanh.f32 %v3204_v7 }
0x13b9   :  { %v2635_v9 = vpop.eup %2634 }
0x13ba   :  { %1362 = vrot.lane.b32.xlu0 %v2635_v9, %s2846_s0 }
0x142c   :  { %v1363_v10 = vpop.permute.xlu0 %1362 }
0x142d   :  { %v1365_v11 = vmul.f32 %v2633_v62, %v1363_v10 }
0x142f   :  { %1373 = vrot.lane.b32.xlu1 %v1365_v11, %s2847_s11 }
0x14a1   :  { %v1374_v12 = vpop.permute.xlu1 %1373 }
0x14a2   :  { %2505 = vmatmul.mubr.msk.f32.vlgmr.msra.gmra.mrb[10].mxu1 %vm424_vm13, %v1374_v12 }
0x14a3   :  { %2513 = vmatpush3.msra.mxu1 %v3172_v40  ;;  %2514 = vmatprep.mubr.msk.f32.mxu1 %vm2843_vm1, %v2841_v4 }
0x14a4   :  { %2522 = vmatprep.subr.mxu1 %v2841_v4 }
0x14a6   :  { %2515 = vmatmul.mubr.msk.f32.vlgmr.msra.gmra.mrb[12].mxu1 %vm424_vm13, %v1374_v12 }
0x14a7   :  { %2523 = vmatpush3.msk.msra.mxu1 %vm1182_vm10, %v3184_v47  ;;  %2524 = vmatprep.mubr.msk.f32.mxu1 %vm2843_vm1, %v2841_v4 }
0x14a8   :  { %2532 = vmatprep.subr.mxu1 %v2841_v4 }
0x1575   :  { %v1443_v14 = vpop.f32.mrb[10].mxu1 }
0x1576   :  { %v3229_v15 = vadd.f32 %v3226_v13, %v1443_v14  ;;  %v2506_v16 = vpop.f32.mrb[11].mxu1 }
0x1578   :  { %v1447_v17 = vsel %vm1176_vm4, %v3229_v15, -inf }
0x1579   :  { %1448 = vmax.xlane.f32.xlu0 %v1447_v17  ;;  %v1626_v18 = vpop.f32.mrb[12].mxu1 }
0x157a   :  { %v2516_v19 = vpop.f32.mrb[13].mxu1 }
0x157b   :  { %v1162_v19 = vstv %s2366_s7 }
0x1606   :  { %v3233_v20 = vpop.xlane.xlu0 %1448 }
0x1607   :  { %vm1461_vm2 = vcmp.eq.f32.partialorder %v3229_v15, %v3233_v20 }
0x1608   :  { %v1462_v21 = vsel %vm1461_vm2, %v2988_v3, 6 }
0x1609   :  { %v1463_v22 = vsel %vm1176_vm4, %v1462_v21, 2147483647 }
0x160a   :  { %v1465_v23 = vshra.s32 %v1463_v22, 16  ;;  %v1464_v25 = vand.u32 65535, %v1463_v22 }
0x160c   :  { %v1467_v24 = vcvt.s32.f32 %v1465_v23  ;;  %v1466_v27 = vcvt.s32.f32 %v1464_v25 }
0x160e   :  { %1468 = vmin.xlane.f32.xlu1 %v1467_v24 }
0x169b   :  { %v1469_v26 = vpop.xlane.xlu1 %1468 }
0x169c   :  { %vm1470_vm11 = vcmp.eq.f32.partialorder %v1467_v24, %v1469_v26  ;;  %v1475_v43 = vcvt.f32.s32 %v1469_v26  ;;  %v1767_v26 = vstv %s1766_s14 }
0x169d   :  { %v1471_v28 = vsel %vm1470_vm11, %v1466_v27, inf  ;;  %vm3397_vm11 = vmmov %vm3395_vm12  ;;  %vm1163_vm12 = vcmp.eq.s32.totalorder %v2988_v3, %v1162_v19  ;;  %vm1768_vm5 = vcmp.eq.s32.totalorder %v1767_v26, 1 }
0x169e   :  { %1472 = vmin.xlane.f32.xlu0 %v1471_v28  ;;  %v1476_v32 = vshll.u32 %v1475_v43, 16  ;;  %vm1164_vm15 = vmand %vm3398_vm7, %vm1163_vm12 }
0x172b   :  { %v1473_v31 = vpop.xlane.xlu0 %1472 }
0x172c   :  { %v1474_v33 = vcvt.f32.s32 %v1473_v31 }
0x172e   :  { %v1477_v38 = vadd.s32 %v1476_v32, %v1474_v33 }
0x1730   :  { %vm1478_vm0 = vcmp.eq.s32.totalorder %v2988_v3, %v1477_v38 }
0x1731   :  { %v2376_v35 = vsel %vm1478_vm0, 1.0, %v2841_v4 }
0x1732   :  { %v1486_v41 = vsel %vm1485_vm14, %v1155_v39, %v2376_v35 }
0x1733   :  { %2510 = vmatmul.mubr.msk.f32.vlgmr.msra.gmra.mrb[12].mxu0 %vm1178_vm3, %v1486_v41 }
0x1734   :  { %2518 = vmatpush3.msra.mxu0 %v3207_v8  ;;  %2519 = vmatprep.mubr.msk.f32.mxu0 %vm2843_vm1, %v2841_v4 }
0x1735   :  { %2527 = vmatprep.subr.mxu0 %v2841_v4 }
0x1806   :  { %v1556_v42 = vpop.f32.mrb[12].mxu0 }
0x1807   :  { %v1627_v44 = vadd.f32 %v1626_v18, %v1556_v42  ;;  %v2511_v46 = vpop.f32.mrb[13].mxu0  ;;  %v1157_v18 = vstv %s2365_s2 }
0x1808   :  { %vm1158_vm2 = vcmp.eq.s32.totalorder %v2988_v3, %v1157_v18 }
0x1809   :  { %v1630_v48 = vadd.f32 %v3199_v54, %v1627_v44  ;;  %vm1159_vm8 = vmand %vm3397_vm11, %vm1158_vm2 }
0x180a   :  { %v1160_v25 = vsel %vm1159_vm8, 1.0, %v2841_v4  ;;  %vm3400_vm8 = vmmov %vm3398_vm7 }
0x180b   :  { %2636 = vtanh.f32 %v1630_v48  ;;  %v2381_v50 = vmul.f32 -1.442695, %v1630_v48  ;;  %v1165_v28 = vsel %vm1164_vm15, 1.0, %v1160_v25 }
0x180d   :  { %2638 = vpow2.f32 %v2381_v50 }
0x1815   :  { %v2637_v49 = vpop.eup %2636 }
0x1816   :  { %1640 = vrot.lane.b32.xlu0 %v2637_v49, %s2844_s25 }
0x1817   :  { %v2639_v51 = vpop.eup %2638 }
0x1818   :  { %v1634_v36 = vadd.f32 1.0, %v2639_v51 }
0x181a   :  { %2640 = vrcp.f32 %v1634_v36 }
0x1824   :  { %v2641_v52 = vpop.eup %2640 }
0x1825   :  { %v1638_v56 = vmul.f32 %v2641_v52, %v3204_v7 }
0x1888   :  { %v1641_v53 = vpop.permute.xlu0 %1640 }
0x1889   :  { %v1643_v55 = vmul.f32 %v2641_v52, %v1641_v53 }
0x188b   :  { %1645 = vrot.lane.b32.xlu1 %v1643_v55, %s2845_s6 }
0x18fd   :  { %v1646_v57 = vpop.permute.xlu1 %1645 }
0x18fe   :  { %v3257_v45 = vadd.f32 %v1646_v57, %v1638_v56 }
0x1900   :  { %2642 = vtanh.f32 %v3257_v45 }
0x190a   :  { %v2643_v58 = vpop.eup %2642 }
0x190b   :  { %1651 = vrot.lane.b32.xlu1 %v2643_v58, %s2846_s0 }
0x197d   :  { %v1652_v59 = vpop.permute.xlu1 %1651 }
0x197e   :  { %v1654_v60 = vmul.f32 %v2641_v52, %v1652_v59 }
0x1980   :  { %1656 = vrot.lane.b32.xlu0 %v1654_v60, %s2847_s11 }
0x19f2   :  { %v1657_v61 = vpop.permute.xlu0 %1656 }
0x19f3   :  { %2520 = vmatmul.mubr.msk.f32.vlgmr.msra.gmra.mrb[14].mxu0 %vm424_vm13, %v1657_v61 }
0x19f4   :  { %2528 = vmatpush3.msra.mxu0 %v3172_v40  ;;  %2529 = vmatprep.mubr.msk.f32.mxu0 %vm2843_vm1, %v2841_v4 }
0x19f5   :  { %2537 = vmatprep.subr.mxu0 %v2841_v4 }
0x19f7   :  { %2530 = vmatmul.mubr.msk.f32.vlgmr.msra.gmra.mrb[16].mxu0 %vm424_vm13, %v1657_v61 }
0x19f8   :  { %2538 = vmatpush3.msk.msra.mxu0 %vm1182_vm10, %v3184_v47  ;;  %2539 = vmatprep.mubr.msk.f32.mxu0 %vm2843_vm1, %v2841_v4 }
0x19f9   :  { %2547 = vmatprep.subr.mxu0 %v2841_v4 }
0x1ac6   :  { %v1726_v62 = vpop.f32.mrb[14].mxu0 }
0x1ac7   :  { %v3274_v63 = vadd.f32 %v3226_v13, %v1726_v62  ;;  %v2521_v0 = vpop.f32.mrb[15].mxu0 }
0x1ac9   :  { %v1730_v1 = vsel %vm1176_vm4, %v3274_v63, -inf }
0x1aca   :  { %1731 = vmax.xlane.f32.xlu1 %v1730_v1  ;;  %v1909_v5 = vpop.f32.mrb[16].mxu0 }
0x1acb   :  { %v2531_v6 = vpop.f32.mrb[17].mxu0 }
0x1acc   :  { %v1167_v6 = vstv %s2367_s1 }
0x1b57   :  { %v3278_v7 = vpop.xlane.xlu1 %1731 }
0x1b58   :  { %vm1744_vm9 = vcmp.eq.f32.partialorder %v3274_v63, %v3278_v7 }
0x1b59   :  { %v1745_v47 = vsel %vm1744_vm9, %v2988_v3, 6  ;;  %vm1168_vm9 = vcmp.eq.s32.totalorder %v2988_v3, %v1167_v6 }
0x1b5a   :  { %v1746_v9 = vsel %vm1176_vm4, %v1745_v47, 2147483647  ;;  %v1172_v47 = vstv %s2368_s20 }
0x1b5b   :  { %v1748_v10 = vshra.s32 %v1746_v9, 16  ;;  %v1747_v12 = vand.u32 65535, %v1746_v9 }
0x1b5d   :  { %v1750_v11 = vcvt.s32.f32 %v1748_v10  ;;  %v1749_v16 = vcvt.s32.f32 %v1747_v12 }
0x1b5f   :  { %1751 = vmin.xlane.f32.xlu0 %v1750_v11 }
0x1bec   :  { %v1752_v14 = vpop.xlane.xlu0 %1751 }
0x1bed   :  { %vm1753_vm10 = vcmp.eq.f32.partialorder %v1750_v11, %v1752_v14  ;;  %v1758_v21 = vcvt.f32.s32 %v1752_v14 }
0x1bee   :  { %v1754_v17 = vsel %vm1753_vm10, %v1749_v16, inf  ;;  %vm3399_vm10 = vmmov %vm3397_vm11  ;;  %vm1173_vm11 = vcmp.eq.s32.totalorder %v2988_v3, %v1172_v47  ;;  %v2050_v16 = vstv %s2049_s17 }
0x1bef   :  { %1755 = vmin.xlane.f32.xlu0 %v1754_v17  ;;  %v1759_v23 = vshll.u32 %v1758_v21, 16  ;;  %vm1169_vm2 = vmand %vm3399_vm10, %vm1168_vm9  ;;  %vm2051_vm7 = vcmp.eq.s32.totalorder %v2050_v16, 1 }
0x1bf0   :  { %v1170_v14 = vsel %vm1169_vm2, 1.0, %v2841_v4  ;;  %vm1174_vm12 = vmand %vm3400_vm8, %vm1173_vm11 }
0x1bf1   :  { %v1175_v18 = vsel %vm1174_vm12, 1.0, %v1170_v14 }
0x1c7c   :  { %v1756_v22 = vpop.xlane.xlu0 %1755 }
0x1c7d   :  { %v1757_v24 = vcvt.f32.s32 %v1756_v22 }
0x1c7f   :  { %v1760_v27 = vadd.s32 %v1759_v23, %v1757_v24 }
0x1c81   :  { %vm1761_vm6 = vcmp.eq.s32.totalorder %v2988_v3, %v1760_v27 }
0x1c82   :  { %v2383_v29 = vsel %vm1761_vm6, 1.0, %v2841_v4 }
0x1c83   :  { %v1769_v30 = vsel %vm1768_vm5, %v1165_v28, %v2383_v29 }
0x1c84   :  { %2525 = vmatmul.mubr.msk.f32.vlgmr.msra.gmra.mrb[14].mxu1 %vm1178_vm3, %v1769_v30 }
0x1c85   :  { %2533 = vmatpush3.msra.mxu1 %v3207_v8  ;;  %2534 = vmatprep.mubr.msk.f32.mxu1 %vm2843_vm1, %v2841_v4 }
0x1c86   :  { %2542 = vmatprep.subr.mxu1 %v2841_v4 }
0x1d57   :  { %v1839_v43 = vpop.f32.mrb[14].mxu1 }
0x1d58   :  { %v1910_v31 = vadd.f32 %v1909_v5, %v1839_v43  ;;  %v2526_v32 = vpop.f32.mrb[15].mxu1 }
0x1d5a   :  { %v1913_v33 = vadd.f32 %v3199_v54, %v1910_v31 }
0x1d5c   :  { %2644 = vtanh.f32 %v1913_v33  ;;  %v2388_v37 = vmul.f32 -1.442695, %v1913_v33  ;;  %v1450_v33 = vsub.f32 %v3229_v15, %v3233_v20 }
0x1d5e   :  { %2646 = vpow2.f32 %v2388_v37  ;;  %v1733_v37 = vsub.f32 %v3274_v63, %v3278_v7 }
0x1d66   :  { %v2645_v34 = vpop.eup %2644 }
0x1d67   :  { %1923 = vrot.lane.b32.xlu1 %v2645_v34, %s2844_s25  ;;  %v1451_v34 = vmul.f32 1.442695, %v1450_v33 }
0x1d68   :  { %v2647_v38 = vpop.eup %2646 }
0x1d69   :  { %v1917_v39 = vadd.f32 1.0, %v2647_v38  ;;  %v1734_v38 = vmul.f32 1.442695, %v1733_v37 }
0x1d6b   :  { %2648 = vrcp.f32 %v1917_v39 }
0x1d75   :  { %v2649_v35 = vpop.eup %2648 }
0x1d76   :  { %v1921_v44 = vmul.f32 %v2649_v35, %v3257_v45 }
0x1dd9   :  { %v1924_v41 = vpop.permute.xlu1 %1923 }
0x1dda   :  { %v1926_v42 = vmul.f32 %v2649_v35, %v1924_v41 }
0x1ddc   :  { %1928 = vrot.lane.b32.xlu0 %v1926_v42, %s2845_s6 }
0x1e4e   :  { %v1929_v46 = vpop.permute.xlu0 %1928 }
0x1e4f   :  { %v3302_v48 = vadd.f32 %v1929_v46, %v1921_v44 }
0x1e51   :  { %2650 = vtanh.f32 %v3302_v48 }
0x1e5b   :  { %v2651_v49 = vpop.eup %2650 }
0x1e5c   :  { %1934 = vrot.lane.b32.xlu1 %v2651_v49, %s2846_s0 }
0x1ece   :  { %v1935_v50 = vpop.permute.xlu1 %1934 }
0x1ecf   :  { %v1937_v51 = vmul.f32 %v2649_v35, %v1935_v50 }
0x1ed1   :  { %1939 = vrot.lane.b32.xlu1 %v1937_v51, %s2847_s11 }
0x1f43   :  { %v1940_v36 = vpop.permute.xlu1 %1939 }
0x1f44   :  { %2535 = vmatmul.mubr.msk.f32.vlgmr.msra.gmra.mrb[16].mxu1 %vm424_vm13, %v1940_v36 }
0x1f45   :  { %2543 = vmatpush3.msra.mxu1 %v3172_v40  ;;  %2544 = vmatprep.mubr.msk.f32.mxu1 %vm2843_vm1, %v2841_v4 }
0x1f48   :  { %2545 = vmatmul.mubr.msk.f32.vlgmr.msra.gmra.mrb[18].mxu1 %vm424_vm13, %v1940_v36 }
0x2017   :  { %v2009_v52 = vpop.f32.mrb[16].mxu1 }
0x2018   :  { %v3313_v53 = vadd.f32 %v3226_v13, %v2009_v52  ;;  %v2536_v55 = vpop.f32.mrb[17].mxu1 }
0x201a   :  { %v2013_v56 = vsel %vm1176_vm4, %v3313_v53, -inf }
0x201b   :  { %2014 = vmax.xlane.f32.xlu0 %v2013_v56  ;;  %v2192_v57 = vpop.f32.mrb[18].mxu1 }
0x201c   :  { %v2546_v45 = vpop.f32.mrb[19].mxu1 }
0x20a8   :  { %v3317_v58 = vpop.xlane.xlu0 %2014 }
0x20a9   :  { %vm2027_vm14 = vcmp.eq.f32.partialorder %v3313_v53, %v3317_v58  ;;  %v2016_v51 = vsub.f32 %v3313_v53, %v3317_v58 }
0x20aa   :  { %v2028_v40 = vsel %vm2027_vm14, %v2988_v3, 6 }
0x20ab   :  { %v2029_v59 = vsel %vm1176_vm4, %v2028_v40, 2147483647  ;;  %v2017_v36 = vmul.f32 1.442695, %v2016_v51 }
0x20ac   :  { %v2031_v60 = vshra.s32 %v2029_v59, 16  ;;  %v2030_v62 = vand.u32 65535, %v2029_v59 }
0x20ae   :  { %v2033_v61 = vcvt.s32.f32 %v2031_v60  ;;  %v2032_v1 = vcvt.s32.f32 %v2030_v62 }
0x20b0   :  { %2034 = vmin.xlane.f32.xlu1 %v2033_v61 }
0x213d   :  { %v2035_v0 = vpop.xlane.xlu1 %2034 }
0x213e   :  { %vm2036_vm0 = vcmp.eq.f32.partialorder %v2033_v61, %v2035_v0  ;;  %v2041_v9 = vcvt.f32.s32 %v2035_v0 }
0x213f   :  { %v2037_v5 = vsel %vm2036_vm0, %v2032_v1, inf }
0x2140   :  { %2038 = vmin.xlane.f32.xlu0 %v2037_v5  ;;  %v2042_v11 = vshll.u32 %v2041_v9, 16 }
0x21cd   :  { %v2039_v10 = vpop.xlane.xlu0 %2038 }
0x21ce   :  { %v2040_v12 = vcvt.f32.s32 %v2039_v10 }
0x21d0   :  { %v2043_v17 = vadd.s32 %v2042_v11, %v2040_v12 }
0x21d2   :  { %vm2044_vm15 = vcmp.eq.s32.totalorder %v2988_v3, %v2043_v17 }
0x21d3   :  { %v2390_v19 = vsel %vm2044_vm15, 1.0, %v2841_v4 }
0x21d4   :  { %v2052_v21 = vsel %vm2051_vm7, %v1175_v18, %v2390_v19 }
0x21d5   :  { %2540 = vmatmul.mubr.msk.f32.vlgmr.msra.gmra.mrb[18].mxu0 %vm1178_vm3, %v2052_v21 }
0x21d6   :  { %2548 = vmatpush3.msra.mxu0 %v3207_v8  ;;  %2549 = vmatprep.mubr.msk.f32.mxu0 %vm2843_vm1, %v2841_v4 }
0x22a8   :  { %v2122_v22 = vpop.f32.mrb[18].mxu0 }
0x22a9   :  { %v2193_v23 = vadd.f32 %v2192_v57, %v2122_v22  ;;  %v2541_v2 = vpop.f32.mrb[19].mxu0 }
0x22ab   :  { %v2196_v24 = vadd.f32 %v3199_v54, %v2193_v23 }
0x22ad   :  { %2652 = vtanh.f32 %v2196_v24  ;;  %v2395_v3 = vmul.f32 -1.442695, %v2196_v24 }
0x22af   :  { %2654 = vpow2.f32 %v2395_v3 }
0x22b7   :  { %v2653_v25 = vpop.eup %2652 }
0x22b8   :  { %2206 = vrot.lane.b32.xlu0 %v2653_v25, %s2844_s25 }
0x22b9   :  { %v2655_v26 = vpop.eup %2654 }
0x22ba   :  { %v2200_v27 = vadd.f32 1.0, %v2655_v26 }
0x22bc   :  { %2656 = vrcp.f32 %v2200_v27 }
0x22c6   :  { %v2657_v28 = vpop.eup %2656 }
0x22c7   :  { %v2204_v4 = vmul.f32 %v2657_v28, %v3302_v48 }
0x232a   :  { %v2207_v29 = vpop.permute.xlu0 %2206 }
0x232b   :  { %v2209_v8 = vmul.f32 %v2657_v28, %v2207_v29 }
0x232d   :  { %2211 = vrot.lane.b32.xlu1 %v2209_v8, %s2845_s6 }
0x239f   :  { %v2212_v30 = vpop.permute.xlu1 %2211 }
0x23a0   :  { %v2214_v43 = vadd.f32 %v2212_v30, %v2204_v4 }
0x23a2   :  { %2658 = vtanh.f32 %v2214_v43 }
0x23a3   :  { %2660 = vpow2.f32 %v1451_v34 }
0x23a4   :  { %2662 = vpow2.f32 %v1734_v38 }
0x23ac   :  { %v2659_v54 = vpop.eup %2658 }
0x23ad   :  { %2217 = vrot.lane.b32.xlu1 %v2659_v54, %s2846_s0  ;;  %v2661_v39 = vpop.eup %2660 }
0x23ae   :  { %v1453_v35 = vsel %vm1176_vm4, %v2661_v39, 0.0  ;;  %v2663_v41 = vpop.eup %2662 }
0x23af   :  { %v1736_v42 = vsel %vm1176_vm4, %v2663_v41, 0.0 }
0x241f   :  { %v2218_v31 = vpop.permute.xlu1 %2217 }
0x2420   :  { %v2220_v32 = vmul.f32 %v2657_v28, %v2218_v31 }
0x2422   :  { %2222 = vrot.lane.b32.xlu0 %v2220_v32, %s2847_s11 }
0x2441   :  { %1454 = vadd.xlane.f32.xlu0 %v1453_v35 }
0x2445   :  { %1737 = vadd.xlane.f32.xlu0 %v1736_v42 }
0x2494   :  { %v2223_v44 = vpop.permute.xlu0 %2222 }
0x2495   :  { %2550 = vmatmul.mubr.msk.f32.vlgmr.msra.gmra.mrb[20].mxu0 %vm424_vm13, %v2223_v44 }
0x24ce   :  { %v1455_v46 = vpop.xlane.xlu0 %1454 }
0x24cf   :  { %2664 = vlog2.f32 %v1455_v46 }
0x24d2   :  { %v1738_v15 = vpop.xlane.xlu0 %1737 }
0x24d3   :  { %2666 = vlog2.f32 %v1738_v15 }
0x24d4   :  { %2668 = vpow2.f32 %v2017_v36 }
0x24d9   :  { %v2665_v20 = vpop.eup %2664 }
0x24da   :  { %v1457_v63 = vmul.f32 0.6931472, %v2665_v20 }
0x24dc   :  { %v1458_v7 = vsub.f32 %v1450_v33, %v1457_v63 }
0x24dd   :  { %v2667_v48 = vpop.eup %2666 }
0x24de   :  { %1460 = vst.msk [vmem:[#allocation15 + $0x2] sm:$0x3] %vm1176_vm4, %v1458_v7  ;;  %v1740_v49 = vmul.f32 0.6931472, %v2667_v48  ;;  %v2669_v45 = vpop.eup %2668 }
0x24df   :  { %v2019_v40 = vsel %vm1176_vm4, %v2669_v45, 0.0 }
0x24e0   :  { %v1741_v50 = vsub.f32 %v1733_v37, %v1740_v49 }
0x24e2   :  { %1743 = vst.msk [vmem:[#allocation15 + $0x4] sm:$0x3] %vm1176_vm4, %v1741_v50 }
0x2568   :  { %v2292_v52 = vpop.f32.mrb[20].mxu0 }
0x2569   :  { %v2293_v55 = vadd.f32 %v3226_v13, %v2292_v52  ;;  %v2551_v56 = vpop.f32.mrb[21].mxu0 }
0x256b   :  { %v2296_v57 = vsel %vm1176_vm4, %v2293_v55, -inf }
0x256c   :  { %2297 = vmax.xlane.f32.xlu1 %v2296_v57 }
0x2570   :  { %2020 = vadd.xlane.f32.xlu1 %v2019_v40 }
0x25f9   :  { %v2298_v59 = vpop.xlane.xlu1 %2297 }
0x25fa   :  { %v2299_v60 = vsub.f32 %v2293_v55, %v2298_v59 }
0x25fc   :  { %v2300_v61 = vmul.f32 1.442695, %v2299_v60 }
0x25fd   :  { %v2021_v62 = vpop.xlane.xlu1 %2020 }
0x25fe   :  { %2670 = vpow2.f32 %v2300_v61 }
0x25ff   :  { %2672 = vlog2.f32 %v2021_v62 }
0x2608   :  { %v2671_v53 = vpop.eup %2670 }
0x2609   :  { %v2673_v58 = vpop.eup %2672  ;;  %v2302_v0 = vsel %vm1176_vm4, %v2671_v53, 0.0 }
0x260a   :  { %v2023_v1 = vmul.f32 0.6931472, %v2673_v58  ;;  %2303 = vadd.xlane.f32.xlu0 %v2302_v0 }
0x260c   :  { %v2024_v13 = vsub.f32 %v2016_v51, %v2023_v1 }
0x260e   :  { %2026 = vst.msk [vmem:[#allocation15 + $0x6] sm:$0x3] %vm1176_vm4, %v2024_v13 }
0x2697   :  { %v2304_v5 = vpop.xlane.xlu0 %2303 }
0x2698   :  { %2674 = vlog2.f32 %v2304_v5 }
0x26a2   :  { %v2675_v6 = vpop.eup %2674 }
0x26a3   :  { %v2306_v47 = vmul.f32 0.6931472, %v2675_v6 }
0x26a5   :  { %v2307_v9 = vsub.f32 %v2299_v60, %v2306_v47 }
0x26a7   :  { %2309 = vst.msk [vmem:[#allocation15 + $0x8] sm:$0x3] %vm1176_vm4, %v2307_v9 }
0x26a8   :  { %2811 = shalt.err (!%p2808_p12)
}
0x26a9   :  { %s2812_s24 = scalar_lea.hbm %s3384_s13, 160 }
0x26aa   :  { %p2813_p13 = scmp.ne.s32.totalorder %s3384_s13, %s2812_s24  ;;  %p2816_p0 = scmp.lt.u32.totalorder %s2812_s24, %s3384_s13 }
0x26ac   :  { %p2818_p1 = pnand %p2816_p0, %p2813_p13 }
0x26ae   :  { %2821 = shalt.err (!%p2818_p1)
}
0x26af   :  { %s2850_s18 = smov 32   ;;  %s2851_s26 = smov 2  }
0x26b0   :  { %2321 = dma.vmem_to_hbm [thread:$0]  %s2316_s22, 160, %s3384_s13, [#allocation4], %s2850_s18, %s2850_s18, %s2851_s26  }
0x26b1   :  { %2832 = dma.done.wait [#allocation4], 160  }
0x26b2   :  { %2833 = vsyncadd [#allocation4], 4294967136 }
0x26b3   :  { %2325 = vsyncpa [#allocation3], 1 }
0x26b4   :  { %2326 = vsyncpa [#allocation11], 1 }
0x26b5   :  { %2327 = vsyncpa [#allocation14], 1 }
0x26b6   :  { %2328 = vsyncpa [#allocation4], 1 }
0x26b7   :  { %2329 = vsyncpa [#allocation5], 1 }
0x26b8   :  { %2330 = vsyncpa [#allocation7], 1 }

</bundles_post_ra>
